<compile_context>
chip_gen: v5e
topology: v5e:2x2
jax: 0.10.0
libtpu: 0.0.40
codegen_flags: <defaults>
</compile_context>

<pallas_src>
import jax
import jax.numpy as jnp
import numpy as np
from jax.experimental import pallas as pl
from jax.experimental.pallas import tpu as pltpu

EPS = 1e-5  # nn.BatchNorm1d default eps


# ------------------------------ kernel helpers --------------------------------


def _bn_relu_from_im2col(hcat, w_ref, g_ref, be_ref):
  """hcat: (L, 3*Cin) f32; w_ref: (3*Cin, Cout) bf16; g/be: (1, Cout) f32."""
  L = hcat.shape[0]
  # Single fused MXU matmul per layer, bf16 inputs, f32 accumulation.
  y = jnp.dot(hcat.astype(jnp.bfloat16), w_ref[...],
              preferred_element_type=jnp.float32)
  # BatchNorm1d (training mode) over the L axis, one-pass stats.
  # Conv bias omitted: it is exactly cancelled by the mean subtraction.
  inv_l = 1.0 / L
  mean = jnp.sum(y, axis=0, keepdims=True) * inv_l
  ex2 = jnp.sum(y * y, axis=0, keepdims=True) * inv_l
  var = ex2 - mean * mean
  scale = g_ref[...] * jax.lax.rsqrt(var + EPS)
  shift = be_ref[...] - mean * scale
  return jnp.maximum(y * scale + shift, 0.0)  # fused BN affine + ReLU


def _conv_bn_relu(h, w_ref, g_ref, be_ref):
  """h: (L, Cin) f32; builds the (L, 3*Cin) im2col in-kernel via sublane rolls."""
  L = h.shape[0]
  row = jax.lax.broadcasted_iota(jnp.int32, (L, 1), 0)
  # zero-padded neighbours: h[l-1] and h[l+1] (cyclic roll + boundary mask;
  # shifts are non-negative as required by pltpu.roll).
  h_prev = jnp.where(row > 0, pltpu.roll(h, shift=1, axis=0), 0.0)
  h_next = jnp.where(row < L - 1, pltpu.roll(h, shift=L - 1, axis=0), 0.0)
  hcat = jnp.concatenate([h_prev, h, h_next], axis=1)  # (L, 3*Cin)
  return _bn_relu_from_im2col(hcat, w_ref, g_ref, be_ref)


def convnet_kernel(
    xcat_ref,
    w1_ref, g1_ref, be1_ref,
    w2_ref, g2_ref, be2_ref,
    w3_ref, g3_ref, be3_ref,
    w4_ref, g4_ref, be4_ref,
    wfc_ref, bfc_ref,
    out_ref,
):
  # Layer 1: im2col was prebuilt in the wrapper (dim_in is tiny / lane-unaligned).
  h = _bn_relu_from_im2col(xcat_ref[...], w1_ref, g1_ref, be1_ref)
  h = _conv_bn_relu(h, w2_ref, g2_ref, be2_ref)
  h = _conv_bn_relu(h, w3_ref, g3_ref, be3_ref)
  h = _conv_bn_relu(h, w4_ref, g4_ref, be4_ref)
  # Final Linear.
  out_ref[...] = (
      jnp.dot(h.astype(jnp.bfloat16), wfc_ref[...],
              preferred_element_type=jnp.float32)
      + bfc_ref[...]
  )


def convnet_forward(x, kp, n_layers=4):
  L = x.shape[0]
  dim_out = kp["wfc"].shape[1]

  # Layer-1 im2col (k=3, pad=1) as cheap wrapper-side layout plumbing:
  # xcat[l] = [x[l-1], x[l], x[l+1]]  (zero padded), shape (L, 3*dim_in).
  xp = jnp.pad(x, ((1, 1), (0, 0)))
  xcat = jnp.concatenate([xp[:-2], xp[1:-1], xp[2:]], axis=1)

  args = [xcat]
  for i in range(1, n_layers + 1):
    args += [kp[f"w{i}"], kp[f"g{i}"], kp[f"be{i}"]]
  args += [kp["wfc"], kp["bfc"]]

  vmem_spec = pl.BlockSpec(memory_space=pltpu.MemorySpace.VMEM)
  return pl.pallas_call(
      convnet_kernel,
      out_shape=jax.ShapeDtypeStruct((L, dim_out), jnp.float32),
      in_specs=[vmem_spec] * len(args),
      out_specs=vmem_spec,
      compiler_params=pltpu.CompilerParams(vmem_limit_bytes=16 * 1024 * 1024),
  )(*args)


# ---------------- parameter setup (deterministic, PyTorch-default-style) -------


def init_params_pt(key, dim_in, dim_out, layer_dims, K=3):
  """Parameters in PyTorch layout: conv (Cout, Cin, K), fc (dim_out, 64)."""
  dims = [dim_in] + list(layer_dims)
  keys = jax.random.split(key, 2 * len(layer_dims) + 2)
  pt = {}
  for i in range(len(layer_dims)):
    cin, cout = dims[i], dims[i + 1]
    bound = 1.0 / np.sqrt(cin * K)
    pt[f"conv{i+1}_w"] = jax.random.uniform(
        keys[2 * i], (cout, cin, K), jnp.float32, -bound, bound)
    pt[f"conv{i+1}_b"] = jax.random.uniform(
        keys[2 * i + 1], (cout,), jnp.float32, -bound, bound)
    pt[f"bn{i+1}_g"] = jnp.ones((cout,), jnp.float32)
    pt[f"bn{i+1}_b"] = jnp.zeros((cout,), jnp.float32)
  bound = 1.0 / np.sqrt(layer_dims[-1])
  pt["fc_w"] = jax.random.uniform(
      keys[-2], (dim_out, layer_dims[-1]), jnp.float32, -bound, bound)
  pt["fc_b"] = jax.random.uniform(
      keys[-1], (dim_out,), jnp.float32, -bound, bound)
  return pt


def to_kernel_params(pt, n_layers=4):
  """Re-layout weights for the (L, C) kernel layout; conv/fc weights in bf16."""
  kp = {}
  for i in range(1, n_layers + 1):
    w = pt[f"conv{i}_w"]                                    # (Cout, Cin, K)
    cout, cin, K = w.shape
    # (K, Cin, Cout) -> stack taps along rows -> (3*Cin, Cout), matching the
    # [x_prev | x | x_next] im2col ordering.
    kp[f"w{i}"] = jnp.transpose(w, (2, 1, 0)).reshape(K * cin, cout).astype(
        jnp.bfloat16)
    # conv bias intentionally dropped (cancelled by training-mode BN mean sub).
    kp[f"g{i}"] = pt[f"bn{i}_g"][None, :]
    kp[f"be{i}"] = pt[f"bn{i}_b"][None, :]
  kp["wfc"] = pt["fc_w"].T.astype(jnp.bfloat16)             # (64, dim_out)
  kp["bfc"] = pt["fc_b"][None, :]
  return kp


# ---------------- float64 numpy reference (PyTorch forward semantics) ----------


def reference_forward_np(x, pt, n_layers=4):
  h = np.asarray(x, np.float64).T  # (Cin, L)   <- x.T before conv1
  ht = None
  for i in range(1, n_layers + 1):
    w = np.asarray(pt[f"conv{i}_w"], np.float64)   # (Cout, Cin, K)
    b = np.asarray(pt[f"conv{i}_b"], np.float64)
    _, L = h.shape
    hp = np.pad(h, ((0, 0), (1, 1)))
    win = np.stack([hp[:, k:k + L] for k in range(w.shape[-1])], axis=-1)
    h = np.einsum("oik,ilk->ol", w, win) + b[:, None]     # conv -> (Cout, L)
    ht = h.T                                              # bn_i(x.T): (L, Cout)
    mean = ht.mean(axis=0, keepdims=True)
    var = ht.var(axis=0, keepdims=True)                   # biased, as in BN
    ht = (ht - mean) / np.sqrt(var + EPS)
    ht = ht * np.asarray(pt[f"bn{i}_g"], np.float64) + np.asarray(
        pt[f"bn{i}_b"], np.float64)
    ht = np.maximum(ht, 0.0)                              # ReLU
    h = ht.T                                              # next conv sees (C, L)
  out = ht @ np.asarray(pt["fc_w"], np.float64).T + np.asarray(
      pt["fc_b"], np.float64)
  return out


if __name__ == "__main__":
  L, dim_in, dim_out = 16, 8, 8
  layer_dims = [512, 256, 128, 64]

  key = jax.random.PRNGKey(0)
  kx, kp_key = jax.random.split(key)
  x = jax.random.normal(kx, (L, dim_in), jnp.float32)

  pt_params = init_params_pt(kp_key, dim_in, dim_out, layer_dims)
  kern_params = to_kernel_params(pt_params)

  out = convnet_forward(x, kern_params)
  out = jax.block_until_ready(out)

  ref = reference_forward_np(np.asarray(x), pt_params)
  # bf16 MXU inputs (f32 accumulate) through 5 stacked matmuls -> slightly looser
  # tolerance than a pure-f32 kernel.
  np.testing.assert_allclose(np.asarray(out), ref, rtol=2e-2, atol=2e-2)

  print("KERNEL_OK")
</pallas_src>

<mosaic_0001>
module attributes {stable_mosaic.version = 11 : i64} {
  func.func @convnet_kernel(%arg0: memref<16x24xf32, #tpu.memory_space<vmem>>, %arg1: memref<24x512xbf16, #tpu.memory_space<vmem>>, %arg2: memref<1x512xf32, #tpu.memory_space<vmem>>, %arg3: memref<1x512xf32, #tpu.memory_space<vmem>>, %arg4: memref<1536x256xbf16, #tpu.memory_space<vmem>>, %arg5: memref<1x256xf32, #tpu.memory_space<vmem>>, %arg6: memref<1x256xf32, #tpu.memory_space<vmem>>, %arg7: memref<768x128xbf16, #tpu.memory_space<vmem>>, %arg8: memref<1x128xf32, #tpu.memory_space<vmem>>, %arg9: memref<1x128xf32, #tpu.memory_space<vmem>>, %arg10: memref<384x64xbf16, #tpu.memory_space<vmem>>, %arg11: memref<1x64xf32, #tpu.memory_space<vmem>>, %arg12: memref<1x64xf32, #tpu.memory_space<vmem>>, %arg13: memref<64x8xbf16, #tpu.memory_space<vmem>>, %arg14: memref<1x8xf32, #tpu.memory_space<vmem>>, %arg15: memref<16x8xf32, #tpu.memory_space<vmem>>) attributes {dimension_semantics = [], scalar_prefetch = 0 : i64, scratch_operands = 0 : i64, tpu.core_type = #tpu.core_type<tc>} {
    %c0 = arith.constant 0 : index
    %c0_0 = arith.constant 0 : index
    %0 = vector.load %arg0[%c0, %c0_0] : memref<16x24xf32, #tpu.memory_space<vmem>>, vector<16x24xf32>
    %1 = arith.truncf %0 : vector<16x24xf32> to vector<16x24xbf16>
    %c0_1 = arith.constant 0 : index
    %c0_2 = arith.constant 0 : index
    %2 = vector.load %arg1[%c0_1, %c0_2] : memref<24x512xbf16, #tpu.memory_space<vmem>>, vector<24x512xbf16>
    %cst = arith.constant dense<0.000000e+00> : vector<16x512xf32>
    %3 = tpu.matmul %1, %2, %cst {dimension_numbers = #tpu.dot_dimension_numbers<[1], [0], [0], [1], [0, 0, 1, 1], [], []>} : vector<16x24xbf16>, vector<24x512xbf16>, vector<16x512xf32> -> vector<16x512xf32>
    %cst_3 = arith.constant dense<0.000000e+00> : vector<512xf32>
    %4 = vector.multi_reduction <add>, %3, %cst_3 [0] : vector<16x512xf32> to vector<512xf32>
    %5 = vector.shape_cast %4 : vector<512xf32> to vector<1x512xf32>
    %cst_4 = arith.constant 6.250000e-02 : f32
    %6 = vector.broadcast %cst_4 : f32 to vector<1x512xf32>
    %7 = arith.mulf %5, %6 : vector<1x512xf32>
    %8 = arith.mulf %3, %3 : vector<16x512xf32>
    %cst_5 = arith.constant dense<0.000000e+00> : vector<512xf32>
    %9 = vector.multi_reduction <add>, %8, %cst_5 [0] : vector<16x512xf32> to vector<512xf32>
    %10 = vector.shape_cast %9 : vector<512xf32> to vector<1x512xf32>
    %cst_6 = arith.constant 6.250000e-02 : f32
    %11 = vector.broadcast %cst_6 : f32 to vector<1x512xf32>
    %12 = arith.mulf %10, %11 : vector<1x512xf32>
    %13 = arith.mulf %7, %7 : vector<1x512xf32>
    %14 = arith.subf %12, %13 : vector<1x512xf32>
    %c0_7 = arith.constant 0 : index
    %c0_8 = arith.constant 0 : index
    %15 = vector.load %arg2[%c0_7, %c0_8] : memref<1x512xf32, #tpu.memory_space<vmem>>, vector<1x512xf32>
    %cst_9 = arith.constant 9.99999974E-6 : f32
    %16 = vector.broadcast %cst_9 : f32 to vector<1x512xf32>
    %17 = arith.addf %14, %16 : vector<1x512xf32>
    %18 = math.rsqrt %17 : vector<1x512xf32>
    %19 = arith.mulf %15, %18 : vector<1x512xf32>
    %c0_10 = arith.constant 0 : index
    %c0_11 = arith.constant 0 : index
    %20 = vector.load %arg3[%c0_10, %c0_11] : memref<1x512xf32, #tpu.memory_space<vmem>>, vector<1x512xf32>
    %21 = arith.mulf %7, %19 : vector<1x512xf32>
    %22 = arith.subf %20, %21 : vector<1x512xf32>
    %23 = vector.broadcast %19 : vector<1x512xf32> to vector<16x512xf32>
    %24 = arith.mulf %3, %23 : vector<16x512xf32>
    %25 = vector.broadcast %22 : vector<1x512xf32> to vector<16x512xf32>
    %26 = arith.addf %24, %25 : vector<16x512xf32>
    %cst_12 = arith.constant 0.000000e+00 : f32
    %27 = vector.broadcast %cst_12 : f32 to vector<16x512xf32>
    %28 = arith.maximumf %26, %27 : vector<16x512xf32>
    %29 = tpu.iota {dimensions = array<i32: 0>} : vector<16x1xi32>
    %c0_i32 = arith.constant 0 : i32
    %30 = vector.broadcast %c0_i32 : i32 to vector<16x1xi32>
    %31 = arith.cmpi sgt, %29, %30 : vector<16x1xi32>
    %c1_i32 = arith.constant 1 : i32
    %32 = tpu.dynamic_rotate %28 by %c1_i32 dim 0 : vector<16x512xf32>, i32 -> vector<16x512xf32>
    %cst_13 = arith.constant 0.000000e+00 : f32
    %33 = vector.shape_cast %31 : vector<16x1xi1> to vector<16x1xi1>
    %34 = vector.broadcast %33 : vector<16x1xi1> to vector<16x512xi1>
    %35 = vector.broadcast %cst_13 : f32 to vector<16x512xf32>
    %36 = arith.select %34, %32, %35 : vector<16x512xi1>, vector<16x512xf32>
    %c15_i32 = arith.constant 15 : i32
    %37 = vector.broadcast %c15_i32 : i32 to vector<16x1xi32>
    %38 = arith.cmpi slt, %29, %37 : vector<16x1xi32>
    %c15_i32_14 = arith.constant 15 : i32
    %39 = tpu.dynamic_rotate %28 by %c15_i32_14 dim 0 : vector<16x512xf32>, i32 -> vector<16x512xf32>
    %cst_15 = arith.constant 0.000000e+00 : f32
    %40 = vector.shape_cast %38 : vector<16x1xi1> to vector<16x1xi1>
    %41 = vector.broadcast %40 : vector<16x1xi1> to vector<16x512xi1>
    %42 = vector.broadcast %cst_15 : f32 to vector<16x512xf32>
    %43 = arith.select %41, %39, %42 : vector<16x512xi1>, vector<16x512xf32>
    %44 = tpu.concatenate %36, %28, %43 in 1 : vector<16x512xf32>, vector<16x512xf32>, vector<16x512xf32> -> vector<16x1536xf32>
    %45 = arith.truncf %44 : vector<16x1536xf32> to vector<16x1536xbf16>
    %c0_16 = arith.constant 0 : index
    %c0_17 = arith.constant 0 : index
    %46 = vector.load %arg4[%c0_16, %c0_17] : memref<1536x256xbf16, #tpu.memory_space<vmem>>, vector<1536x256xbf16>
    %cst_18 = arith.constant dense<0.000000e+00> : vector<16x256xf32>
    %47 = tpu.matmul %45, %46, %cst_18 {dimension_numbers = #tpu.dot_dimension_numbers<[1], [0], [0], [1], [0, 0, 1, 1], [], []>} : vector<16x1536xbf16>, vector<1536x256xbf16>, vector<16x256xf32> -> vector<16x256xf32>
    %cst_19 = arith.constant dense<0.000000e+00> : vector<256xf32>
    %48 = vector.multi_reduction <add>, %47, %cst_19 [0] : vector<16x256xf32> to vector<256xf32>
    %49 = vector.shape_cast %48 : vector<256xf32> to vector<1x256xf32>
    %cst_20 = arith.constant 6.250000e-02 : f32
    %50 = vector.broadcast %cst_20 : f32 to vector<1x256xf32>
    %51 = arith.mulf %49, %50 : vector<1x256xf32>
    %52 = arith.mulf %47, %47 : vector<16x256xf32>
    %cst_21 = arith.constant dense<0.000000e+00> : vector<256xf32>
    %53 = vector.multi_reduction <add>, %52, %cst_21 [0] : vector<16x256xf32> to vector<256xf32>
    %54 = vector.shape_cast %53 : vector<256xf32> to vector<1x256xf32>
    %cst_22 = arith.constant 6.250000e-02 : f32
    %55 = vector.broadcast %cst_22 : f32 to vector<1x256xf32>
    %56 = arith.mulf %54, %55 : vector<1x256xf32>
    %57 = arith.mulf %51, %51 : vector<1x256xf32>
    %58 = arith.subf %56, %57 : vector<1x256xf32>
    %c0_23 = arith.constant 0 : index
    %c0_24 = arith.constant 0 : index
    %59 = vector.load %arg5[%c0_23, %c0_24] : memref<1x256xf32, #tpu.memory_space<vmem>>, vector<1x256xf32>
    %cst_25 = arith.constant 9.99999974E-6 : f32
    %60 = vector.broadcast %cst_25 : f32 to vector<1x256xf32>
    %61 = arith.addf %58, %60 : vector<1x256xf32>
    %62 = math.rsqrt %61 : vector<1x256xf32>
    %63 = arith.mulf %59, %62 : vector<1x256xf32>
    %c0_26 = arith.constant 0 : index
    %c0_27 = arith.constant 0 : index
    %64 = vector.load %arg6[%c0_26, %c0_27] : memref<1x256xf32, #tpu.memory_space<vmem>>, vector<1x256xf32>
    %65 = arith.mulf %51, %63 : vector<1x256xf32>
    %66 = arith.subf %64, %65 : vector<1x256xf32>
    %67 = vector.broadcast %63 : vector<1x256xf32> to vector<16x256xf32>
    %68 = arith.mulf %47, %67 : vector<16x256xf32>
    %69 = vector.broadcast %66 : vector<1x256xf32> to vector<16x256xf32>
    %70 = arith.addf %68, %69 : vector<16x256xf32>
    %cst_28 = arith.constant 0.000000e+00 : f32
    %71 = vector.broadcast %cst_28 : f32 to vector<16x256xf32>
    %72 = arith.maximumf %70, %71 : vector<16x256xf32>
    %73 = tpu.iota {dimensions = array<i32: 0>} : vector<16x1xi32>
    %c0_i32_29 = arith.constant 0 : i32
    %74 = vector.broadcast %c0_i32_29 : i32 to vector<16x1xi32>
    %75 = arith.cmpi sgt, %73, %74 : vector<16x1xi32>
    %c1_i32_30 = arith.constant 1 : i32
    %76 = tpu.dynamic_rotate %72 by %c1_i32_30 dim 0 : vector<16x256xf32>, i32 -> vector<16x256xf32>
    %cst_31 = arith.constant 0.000000e+00 : f32
    %77 = vector.shape_cast %75 : vector<16x1xi1> to vector<16x1xi1>
    %78 = vector.broadcast %77 : vector<16x1xi1> to vector<16x256xi1>
    %79 = vector.broadcast %cst_31 : f32 to vector<16x256xf32>
    %80 = arith.select %78, %76, %79 : vector<16x256xi1>, vector<16x256xf32>
    %c15_i32_32 = arith.constant 15 : i32
    %81 = vector.broadcast %c15_i32_32 : i32 to vector<16x1xi32>
    %82 = arith.cmpi slt, %73, %81 : vector<16x1xi32>
    %c15_i32_33 = arith.constant 15 : i32
    %83 = tpu.dynamic_rotate %72 by %c15_i32_33 dim 0 : vector<16x256xf32>, i32 -> vector<16x256xf32>
    %cst_34 = arith.constant 0.000000e+00 : f32
    %84 = vector.shape_cast %82 : vector<16x1xi1> to vector<16x1xi1>
    %85 = vector.broadcast %84 : vector<16x1xi1> to vector<16x256xi1>
    %86 = vector.broadcast %cst_34 : f32 to vector<16x256xf32>
    %87 = arith.select %85, %83, %86 : vector<16x256xi1>, vector<16x256xf32>
    %88 = tpu.concatenate %80, %72, %87 in 1 : vector<16x256xf32>, vector<16x256xf32>, vector<16x256xf32> -> vector<16x768xf32>
    %89 = arith.truncf %88 : vector<16x768xf32> to vector<16x768xbf16>
    %c0_35 = arith.constant 0 : index
    %c0_36 = arith.constant 0 : index
    %90 = vector.load %arg7[%c0_35, %c0_36] : memref<768x128xbf16, #tpu.memory_space<vmem>>, vector<768x128xbf16>
    %cst_37 = arith.constant dense<0.000000e+00> : vector<16x128xf32>
    %91 = tpu.matmul %89, %90, %cst_37 {dimension_numbers = #tpu.dot_dimension_numbers<[1], [0], [0], [1], [0, 0, 1, 1], [], []>} : vector<16x768xbf16>, vector<768x128xbf16>, vector<16x128xf32> -> vector<16x128xf32>
    %cst_38 = arith.constant dense<0.000000e+00> : vector<128xf32>
    %92 = vector.multi_reduction <add>, %91, %cst_38 [0] : vector<16x128xf32> to vector<128xf32>
    %93 = vector.shape_cast %92 : vector<128xf32> to vector<1x128xf32>
    %cst_39 = arith.constant 6.250000e-02 : f32
    %94 = vector.broadcast %cst_39 : f32 to vector<1x128xf32>
    %95 = arith.mulf %93, %94 : vector<1x128xf32>
    %96 = arith.mulf %91, %91 : vector<16x128xf32>
    %cst_40 = arith.constant dense<0.000000e+00> : vector<128xf32>
    %97 = vector.multi_reduction <add>, %96, %cst_40 [0] : vector<16x128xf32> to vector<128xf32>
    %98 = vector.shape_cast %97 : vector<128xf32> to vector<1x128xf32>
    %cst_41 = arith.constant 6.250000e-02 : f32
    %99 = vector.broadcast %cst_41 : f32 to vector<1x128xf32>
    %100 = arith.mulf %98, %99 : vector<1x128xf32>
    %101 = arith.mulf %95, %95 : vector<1x128xf32>
    %102 = arith.subf %100, %101 : vector<1x128xf32>
    %c0_42 = arith.constant 0 : index
    %c0_43 = arith.constant 0 : index
    %103 = vector.load %arg8[%c0_42, %c0_43] : memref<1x128xf32, #tpu.memory_space<vmem>>, vector<1x128xf32>
    %cst_44 = arith.constant 9.99999974E-6 : f32
    %104 = vector.broadcast %cst_44 : f32 to vector<1x128xf32>
    %105 = arith.addf %102, %104 : vector<1x128xf32>
    %106 = math.rsqrt %105 : vector<1x128xf32>
    %107 = arith.mulf %103, %106 : vector<1x128xf32>
    %c0_45 = arith.constant 0 : index
    %c0_46 = arith.constant 0 : index
    %108 = vector.load %arg9[%c0_45, %c0_46] : memref<1x128xf32, #tpu.memory_space<vmem>>, vector<1x128xf32>
    %109 = arith.mulf %95, %107 : vector<1x128xf32>
    %110 = arith.subf %108, %109 : vector<1x128xf32>
    %111 = vector.broadcast %107 : vector<1x128xf32> to vector<16x128xf32>
    %112 = arith.mulf %91, %111 : vector<16x128xf32>
    %113 = vector.broadcast %110 : vector<1x128xf32> to vector<16x128xf32>
    %114 = arith.addf %112, %113 : vector<16x128xf32>
    %cst_47 = arith.constant 0.000000e+00 : f32
    %115 = vector.broadcast %cst_47 : f32 to vector<16x128xf32>
    %116 = arith.maximumf %114, %115 : vector<16x128xf32>
    %117 = tpu.iota {dimensions = array<i32: 0>} : vector<16x1xi32>
    %c0_i32_48 = arith.constant 0 : i32
    %118 = vector.broadcast %c0_i32_48 : i32 to vector<16x1xi32>
    %119 = arith.cmpi sgt, %117, %118 : vector<16x1xi32>
    %c1_i32_49 = arith.constant 1 : i32
    %120 = tpu.dynamic_rotate %116 by %c1_i32_49 dim 0 : vector<16x128xf32>, i32 -> vector<16x128xf32>
    %cst_50 = arith.constant 0.000000e+00 : f32
    %121 = vector.shape_cast %119 : vector<16x1xi1> to vector<16x1xi1>
    %122 = vector.broadcast %121 : vector<16x1xi1> to vector<16x128xi1>
    %123 = vector.broadcast %cst_50 : f32 to vector<16x128xf32>
    %124 = arith.select %122, %120, %123 : vector<16x128xi1>, vector<16x128xf32>
    %c15_i32_51 = arith.constant 15 : i32
    %125 = vector.broadcast %c15_i32_51 : i32 to vector<16x1xi32>
    %126 = arith.cmpi slt, %117, %125 : vector<16x1xi32>
    %c15_i32_52 = arith.constant 15 : i32
    %127 = tpu.dynamic_rotate %116 by %c15_i32_52 dim 0 : vector<16x128xf32>, i32 -> vector<16x128xf32>
    %cst_53 = arith.constant 0.000000e+00 : f32
    %128 = vector.shape_cast %126 : vector<16x1xi1> to vector<16x1xi1>
    %129 = vector.broadcast %128 : vector<16x1xi1> to vector<16x128xi1>
    %130 = vector.broadcast %cst_53 : f32 to vector<16x128xf32>
    %131 = arith.select %129, %127, %130 : vector<16x128xi1>, vector<16x128xf32>
    %132 = tpu.concatenate %124, %116, %131 in 1 : vector<16x128xf32>, vector<16x128xf32>, vector<16x128xf32> -> vector<16x384xf32>
    %133 = arith.truncf %132 : vector<16x384xf32> to vector<16x384xbf16>
    %c0_54 = arith.constant 0 : index
    %c0_55 = arith.constant 0 : index
    %134 = vector.load %arg10[%c0_54, %c0_55] : memref<384x64xbf16, #tpu.memory_space<vmem>>, vector<384x64xbf16>
    %cst_56 = arith.constant dense<0.000000e+00> : vector<16x64xf32>
    %135 = tpu.matmul %133, %134, %cst_56 {dimension_numbers = #tpu.dot_dimension_numbers<[1], [0], [0], [1], [0, 0, 1, 1], [], []>} : vector<16x384xbf16>, vector<384x64xbf16>, vector<16x64xf32> -> vector<16x64xf32>
    %cst_57 = arith.constant dense<0.000000e+00> : vector<64xf32>
    %136 = vector.multi_reduction <add>, %135, %cst_57 [0] : vector<16x64xf32> to vector<64xf32>
    %137 = vector.shape_cast %136 : vector<64xf32> to vector<1x64xf32>
    %cst_58 = arith.constant 6.250000e-02 : f32
    %138 = vector.broadcast %cst_58 : f32 to vector<1x64xf32>
    %139 = arith.mulf %137, %138 : vector<1x64xf32>
    %140 = arith.mulf %135, %135 : vector<16x64xf32>
    %cst_59 = arith.constant dense<0.000000e+00> : vector<64xf32>
    %141 = vector.multi_reduction <add>, %140, %cst_59 [0] : vector<16x64xf32> to vector<64xf32>
    %142 = vector.shape_cast %141 : vector<64xf32> to vector<1x64xf32>
    %cst_60 = arith.constant 6.250000e-02 : f32
    %143 = vector.broadcast %cst_60 : f32 to vector<1x64xf32>
    %144 = arith.mulf %142, %143 : vector<1x64xf32>
    %145 = arith.mulf %139, %139 : vector<1x64xf32>
    %146 = arith.subf %144, %145 : vector<1x64xf32>
    %c0_61 = arith.constant 0 : index
    %c0_62 = arith.constant 0 : index
    %147 = vector.load %arg11[%c0_61, %c0_62] : memref<1x64xf32, #tpu.memory_space<vmem>>, vector<1x64xf32>
    %cst_63 = arith.constant 9.99999974E-6 : f32
    %148 = vector.broadcast %cst_63 : f32 to vector<1x64xf32>
    %149 = arith.addf %146, %148 : vector<1x64xf32>
    %150 = math.rsqrt %149 : vector<1x64xf32>
    %151 = arith.mulf %147, %150 : vector<1x64xf32>
    %c0_64 = arith.constant 0 : index
    %c0_65 = arith.constant 0 : index
    %152 = vector.load %arg12[%c0_64, %c0_65] : memref<1x64xf32, #tpu.memory_space<vmem>>, vector<1x64xf32>
    %153 = arith.mulf %139, %151 : vector<1x64xf32>
    %154 = arith.subf %152, %153 : vector<1x64xf32>
    %155 = vector.broadcast %151 : vector<1x64xf32> to vector<16x64xf32>
    %156 = arith.mulf %135, %155 : vector<16x64xf32>
    %157 = vector.broadcast %154 : vector<1x64xf32> to vector<16x64xf32>
    %158 = arith.addf %156, %157 : vector<16x64xf32>
    %cst_66 = arith.constant 0.000000e+00 : f32
    %159 = vector.broadcast %cst_66 : f32 to vector<16x64xf32>
    %160 = arith.maximumf %158, %159 : vector<16x64xf32>
    %161 = arith.truncf %160 : vector<16x64xf32> to vector<16x64xbf16>
    %c0_67 = arith.constant 0 : index
    %c0_68 = arith.constant 0 : index
    %162 = vector.load %arg13[%c0_67, %c0_68] : memref<64x8xbf16, #tpu.memory_space<vmem>>, vector<64x8xbf16>
    %cst_69 = arith.constant dense<0.000000e+00> : vector<16x8xf32>
    %163 = tpu.matmul %161, %162, %cst_69 {dimension_numbers = #tpu.dot_dimension_numbers<[1], [0], [0], [1], [0, 0, 1, 1], [], []>} : vector<16x64xbf16>, vector<64x8xbf16>, vector<16x8xf32> -> vector<16x8xf32>
    %c0_70 = arith.constant 0 : index
    %c0_71 = arith.constant 0 : index
    %164 = vector.load %arg14[%c0_70, %c0_71] : memref<1x8xf32, #tpu.memory_space<vmem>>, vector<1x8xf32>
    %165 = vector.broadcast %164 : vector<1x8xf32> to vector<16x8xf32>
    %166 = arith.addf %163, %165 : vector<16x8xf32>
    %c0_72 = arith.constant 0 : index
    %c0_73 = arith.constant 0 : index
    %167 = vector.load %arg15[%c0_72, %c0_73] : memref<16x8xf32, #tpu.memory_space<vmem>>, vector<16x8xf32>
    tpu.vector_store %arg15[%c0_72, %c0_73], %166 {strides = array<i32>} : memref<16x8xf32, #tpu.memory_space<vmem>>, vector<16x8xf32>,
    return
  }
}

</mosaic_0001>

<bundles_post_ra>
// kernel: tpu_custom_call.1
= control target key start
LH: loop header
LB: loop body
LE: loop exit
PB: predicated region body
PF: predicated region fallthrough
CT: control target
= control target key end

     0   :  { %20 = vsyncpa [#allocation3], 0  ;;  %s5166_s0 = inlined_call_operand.vmem [shape: f32[16,24], index: 0, kind: input, shape index: {}]   ;;  %s5167_s1 = inlined_call_operand.vmem [shape: bf16[24,512], index: 1, kind: input, shape index: {}]   ;;  %s5168_s2 = inlined_call_operand.vmem [shape: f32[1,512], index: 2, kind: input, shape index: {}]   ;;  %s5169_s3 = inlined_call_operand.vmem [shape: f32[1,512], index: 3, kind: input, shape index: {}]   ;;  %s5170_s4 = inlined_call_operand.hbm [shape: bf16[1536,256], index: 4, kind: input, shape index: {}]   ;;  %s5171_s5 = inlined_call_operand.vmem [shape: f32[1,256], index: 5, kind: input, shape index: {}]   ;;  %s5172_s6 = inlined_call_operand.vmem [shape: f32[1,256], index: 6, kind: input, shape index: {}]   ;;  %s5173_s7 = inlined_call_operand.hbm [shape: bf16[768,128], index: 7, kind: input, shape index: {}]   ;;  %s5174_s8 = inlined_call_operand.vmem [shape: f32[1,128], index: 8, kind: input, shape index: {}]   ;;  %s5175_s9 = inlined_call_operand.vmem [shape: f32[1,128], index: 9, kind: input, shape index: {}]   ;;  %s5176_s10 = inlined_call_operand.vmem [shape: bf16[384,64], index: 10, kind: input, shape index: {}]   ;;  %s5177_s11 = inlined_call_operand.vmem [shape: f32[1,64], index: 11, kind: input, shape index: {}]   ;;  %s5178_s12 = inlined_call_operand.vmem [shape: f32[1,64], index: 12, kind: input, shape index: {}]   ;;  %s5179_s13 = inlined_call_operand.vmem [shape: bf16[64,8], index: 13, kind: input, shape index: {}]   ;;  %s5180_s14 = inlined_call_operand.vmem [shape: f32[1,8], index: 14, kind: input, shape index: {}]   ;;  %s5181_s15 = inlined_call_operand.vmem [shape: f32[16,8], index: 15, kind: output, shape index: {}]  }
   0x1   :  { %s34_s20 = sshll.u32 %s5170_s4, 4  ;;  %s35_s20 = int_to_ptr.hbm [resolvable:$true] %s34_s20 }
   0x2   :  { %21 = vsyncpa [#allocation5], 0  ;;  %s4477_s21 = smov [#allocation2]   ;;  %s51_s25 = sshll.u32 %s5173_s7, 4  ;;  %s52_s25 = int_to_ptr.hbm [resolvable:$true] %s51_s25 }
   0x3   :  { %s36_s22 = sshll.u32 %s4477_s21, 4  ;;  %s4478_s26 = smov 128   ;;  %s37_s22 = int_to_ptr.vmem [resolvable:$true] %s36_s22 }
   0x4   :  { %s4479_s27 = smov 8   ;;  %s4480_s28 = smov [#allocation4]  }
   0x5   :  { %42 = dma.hbm_to_vmem [thread:$0]  %s35_s20, 24576, %s37_s22, [#allocation3], %s4478_s26, %s4478_s26, %s4479_s27  }
   0x6   :  { %s53_s29 = sshll.u32 %s4480_s28, 4  ;;  %s4481_s30 = smov 64   ;;  %s54_s29 = int_to_ptr.vmem [resolvable:$true] %s53_s29 }
   0x7   :  { %s4482_s16 = smov 4  }
   0x8   :  { %59 = dma.hbm_to_vmem [thread:$0]  %s52_s25, 6144, %s54_s29, [#allocation5], %s4481_s30, %s4481_s30, %s4482_s16  }
   0x9   :  { %4473 = dma.done.wait [#allocation3], 24576  }
   0xa   :  { %4474 = vsyncadd [#allocation3], 4294942720 }
   0xb   :  { %4475 = dma.done.wait [#allocation5], 6144  }
   0xc   :  { %4476 = vsyncadd [#allocation5], 4294961152  ;;  %v90_v0 = vld [vmem:[%s5167_s1 + $0x20] sm:$0xff]  ;;  %v91_v1 = vld [vmem:[%s5167_s1 + $0x28] sm:$0xff]  ;;  %vm126_vm0 = vcmask 1043456   ;;  %vm122_vm1 = vcmask 195584  }
   0xd   :  { %v106_v2 = vunpack.c.l.b16 %v90_v0  ;;  %v107_v3 = vunpack.c.h.b16 %v90_v0  ;;  %v109_v4 = vunpack.c.h.b16 %v91_v1  ;;  %v108_v5 = vunpack.c.l.b16 %v91_v1  ;;  %v2972_v6 = vld [vmem:[%s5167_s1] sm:$0xf]  ;;  %v4131_v10 = vld [vmem:[%s5167_s1 + $0xc] sm:$0xf0]  ;;  %v4129_v11 = vld [vmem:[%s5167_s1 + $0x4] sm:$0xf] }
   0xe   :  { %v2974_v12 = vld [vmem:[%s5167_s1 + $0x10] sm:$0xf0]  ;;  %v4130_v13 = vld [vmem:[%s5167_s1 + $0xc] sm:$0xf]  ;;  %v2982_v14 = vld [vmem:[%s5167_s1 + $0x18] sm:$0xf0]  ;;  %v2973_v19 = vor.u32 %v4131_v10, %v2972_v6 }
   0xf   :  { %v114_v7 = vpack.c.b16 %v106_v2, %v106_v2  ;;  %v115_v8 = vpack.c.b16 %v107_v3, %v107_v3  ;;  %v117_v9 = vpack.c.b16 %v109_v4, %v109_v4  ;;  %v116_v15 = vpack.c.b16 %v108_v5, %v108_v5  ;;  %v83_v21 = vld [vmem:[%s5166_s0] sm:$0xff]  ;;  %v84_v22 = vld [vmem:[%s5166_s0 + $0x8] sm:$0xff]  ;;  %v4132_v26 = vld [vmem:[%s5167_s1 + $0x14] sm:$0xf0] }
  0x10   :  { %v2977_v20 = vor.u32 %v4129_v11, %v2974_v12  ;;  %v2985_v23 = vor.u32 %v4130_v13, %v2982_v14  ;;  %v2980_v25 = vld [vmem:[%s5167_s1 + $0x8] sm:$0xf]  ;;  %v85_v27 = vpack.c.bf16 %v84_v22, %v83_v21  ;;  %v3048_v34 = vld [vmem:[#allocation2 + $0x70] sm:$0xf]  ;;  %v4148_v35 = vld [vmem:[#allocation2 + $0x74] sm:$0xf0] }
  0x11   :  { %v128_v16 = vsel %vm126_vm0, %v114_v7, 0  ;;  %v131_v17 = vsel %vm126_vm0, %v115_v8, 0  ;;  %v137_v18 = vsel %vm126_vm0, %v117_v9, 0  ;;  %v134_v24 = vsel %vm126_vm0, %v116_v15, 0  ;;  %v3112_v36 = vld [vmem:[#allocation2 + $0xf0] sm:$0xf] }
  0x12   :  { %145 = vmatpush.bf16.msra.mxu2 %v128_v16  ;;  %159 = vmatpush.bf16.msra.mxu1 %v131_v17  ;;  %v2981_v28 = vor.u32 %v4132_v26, %v2980_v25  ;;  %v3049_v39 = vor.u32 %v4148_v35, %v3048_v34  ;;  %v4164_v40 = vld [vmem:[#allocation2 + $0xf4] sm:$0xf0]  ;;  %v3176_v41 = vld [vmem:[#allocation2 + $0x170] sm:$0xf]  ;;  %v3040_v50 = vld [vmem:[#allocation2 + $0x60] sm:$0xf] }
  0x13   :  { %187 = vmatpush.bf16.msra.mxu3 %v137_v18  ;;  %v4180_v42 = vld [vmem:[#allocation2 + $0x174] sm:$0xf0]  ;;  %v3113_v43 = vor.u32 %v4164_v40, %v3112_v36  ;;  %v3240_v45 = vld [vmem:[#allocation2 + $0x1f0] sm:$0xf]  ;;  %v4146_v51 = vld [vmem:[#allocation2 + $0x64] sm:$0xf0] }
  0x14   :  { %v3177_v44 = vor.u32 %v4180_v42, %v3176_v41  ;;  %v4196_v46 = vld [vmem:[#allocation2 + $0x1f4] sm:$0xf0]  ;;  %1623 = vmatpush.bf16.msra.mxu0 %v3049_v39  ;;  %v3104_v52 = vld [vmem:[#allocation2 + $0xe0] sm:$0xf]  ;;  %v3041_v55 = vor.u32 %v4146_v51, %v3040_v50  ;;  %v4162_v56 = vld [vmem:[#allocation2 + $0xe4] sm:$0xf0] }
  0x15   :  { %v3241_v49 = vor.u32 %v4196_v46, %v3240_v45  ;;  %v3168_v57 = vld [vmem:[#allocation2 + $0x160] sm:$0xf]  ;;  %v3105_v61 = vor.u32 %v4162_v56, %v3104_v52  ;;  %v4178_v62 = vld [vmem:[#allocation2 + $0x164] sm:$0xf0]  ;;  %v3032_v10 = vld [vmem:[#allocation2 + $0x50] sm:$0xf] }
  0x16   :  { %146 = vmatpush.bf16.msra.mxu2 %v2973_v19  ;;  %160 = vmatpush.bf16.msra.mxu1 %v2977_v20  ;;  %v3232_v63 = vld [vmem:[#allocation2 + $0x1e0] sm:$0xf]  ;;  %v4194_v0 = vld [vmem:[#allocation2 + $0x1e4] sm:$0xf0]  ;;  %v3169_v8 = vor.u32 %v4178_v62, %v3168_v57  ;;  %v4144_v11 = vld [vmem:[#allocation2 + $0x54] sm:$0xf0] }
  0x17   :  { %188 = vmatpush.bf16.msra.mxu3 %v2985_v23  ;;  %v3233_v9 = vor.u32 %v4194_v0, %v3232_v63  ;;  %v3096_v12 = vld [vmem:[#allocation2 + $0xd0] sm:$0xf]  ;;  %v4160_v17 = vld [vmem:[#allocation2 + $0xd4] sm:$0xf0]  ;;  %v3033_v21 = vor.u32 %v4144_v11, %v3032_v10  ;;  %v4142_v39 = vld [vmem:[#allocation2 + $0x44] sm:$0xf0] }
  0x18   :  { %1624 = vmatpush.bf16.msra.mxu0 %v3041_v55  ;;  %v3160_v18 = vld [vmem:[#allocation2 + $0x150] sm:$0xf]  ;;  %v3097_v22 = vor.u32 %v4160_v17, %v3096_v12  ;;  %v4176_v23 = vld [vmem:[#allocation2 + $0x154] sm:$0xf0]  ;;  %v4158_v45 = vld [vmem:[#allocation2 + $0xc4] sm:$0xf0] }
  0x19   :  { %2986 = vmatmul.msk.bf16.vlgmr.msra.gmra.mxu2 %vm122_vm1, %v85_v27  ;;  %2987 = vmatmul.msk.bf16.vlgmr.msra.gmra.mxu1 %vm122_vm1, %v85_v27  ;;  %v3161_v36 = vor.u32 %v4176_v23, %v3160_v18  ;;  %v3152_v51 = vld [vmem:[#allocation2 + $0x140] sm:$0xf]  ;;  %v4174_v52 = vld [vmem:[#allocation2 + $0x144] sm:$0xf0]  ;;  %v3016_v62 = vld [vmem:[#allocation2 + $0x30] sm:$0xf] }
  0x1a   :  { %173 = vmatpush.bf16.msrb.mxu2 %v134_v24  ;;  %2989 = vmatmul.msk.bf16.vlgmr.msra.gmra.mxu3 %vm122_vm1, %v85_v27  ;;  %v3224_v24 = vld [vmem:[#allocation2 + $0x1d0] sm:$0xf]  ;;  %v3216_v57 = vld [vmem:[#allocation2 + $0x1c0] sm:$0xf]  ;;  %v4156_v10 = vld [vmem:[#allocation2 + $0xb4] sm:$0xf0] }
  0x1b   :  { %1637 = vmatpush.bf16.msrb.mxu1 %v3113_v43  ;;  %1665 = vmatpush.bf16.msrb.mxu3 %v3241_v49  ;;  %v3144_v11 = vld [vmem:[#allocation2 + $0x130] sm:$0xf]  ;;  %v3008_v23 = vld [vmem:[#allocation2 + $0x20] sm:$0xf]  ;;  %vm327_vm14 = vcmask 1040384   ;;  %vm329_vm15 = vcmask 1042434  }
  0x1c   :  { %1625 = vmatpush.bf16.msra.mxu0 %v3033_v21  ;;  %v3208_v17 = vld [vmem:[#allocation2 + $0x1b0] sm:$0xf]  ;;  %vm331_vm0 = vcmask 1041408  }
  0x1e   :  { %174 = vmatpush.bf16.msrb.mxu2 %v2981_v28 }
  0x1f   :  { %1638 = vmatpush.bf16.msrb.mxu1 %v3105_v61  ;;  %1666 = vmatpush.bf16.msrb.mxu3 %v3233_v9 }
  0x22   :  { %1651 = vmatpush.bf16.msra.mxu2 %v3177_v44  ;;  %v3088_v44 = vld [vmem:[#allocation2 + $0xc0] sm:$0xf] }
  0x23   :  { %1639 = vmatpush.bf16.msrb.mxu1 %v3097_v22  ;;  %v3089_v50 = vor.u32 %v4158_v45, %v3088_v44  ;;  %v4188_v22 = vld [vmem:[#allocation2 + $0x1b4] sm:$0xf0] }
  0x26   :  { %1652 = vmatpush.bf16.msra.mxu2 %v3169_v8  ;;  %v3153_v8 = vor.u32 %v4174_v52, %v3152_v51 }
  0x27   :  { %1640 = vmatpush.bf16.msrb.mxu1 %v3089_v50  ;;  %v4186_v50 = vld [vmem:[#allocation2 + $0x1a4] sm:$0xf0] }
  0x29   :  { %2988 = vmatmul.msk.bf16.vlgmr.msrb.gmra.mxu2 %vm122_vm1, %v85_v27 }
  0x2a   :  { %1653 = vmatpush.bf16.msra.mxu2 %v3161_v36 }
  0x2e   :  { %1654 = vmatpush.bf16.msra.mxu2 %v3153_v8 }
  0x96   :  { %v4610_v29 = vpop.f32.mrf.mxu1 }
  0x97   :  { %v228_v31 = vmul.f32 %v4610_v29, %v4610_v29 }
  0x9c   :  { %v4612_v30 = vpop.f32.mrf.mxu2 }
  0x9d   :  { %v4616_v32 = vpop.f32.mrf.mxu3  ;;  %v227_v58 = vmul.f32 %v4612_v30, %v4612_v30 }
  0x9e   :  { %v4618_v33 = vpop.f32.mrf.mxu1  ;;  %v230_v59 = vmul.f32 %v4616_v32, %v4616_v32 }
  0x9f   :  { %v202_v37 = vadd.f32 %v4618_v33, %v4610_v29  ;;  %v232_v38 = vmul.f32 %v4618_v33, %v4618_v33 }
  0xa1   :  { %v203_v47 = vrot.slane %v202_v37, 4  ;;  %v242_v48 = vadd.f32 %v232_v38, %v228_v31  ;;  %v4192_v31 = vld [vmem:[#allocation2 + $0x1d4] sm:$0xf0]  ;;  %v3024_v38 = vld [vmem:[#allocation2 + $0x40] sm:$0xf] }
  0xa2   :  { %v3025_v49 = vor.u32 %v4142_v39, %v3024_v38  ;;  %v4154_v38 = vld [vmem:[#allocation2 + $0xa4] sm:$0xf0] }
  0xa3   :  { %v204_v53 = vadd.f32 %v203_v47, %v202_v37  ;;  %v243_v54 = vrot.slane %v242_v48, 4  ;;  %v3225_v37 = vor.u32 %v4192_v31, %v3224_v24 }
  0xa4   :  { %v4628_v60 = vpop.f32.mrf.mxu2  ;;  %1626 = vmatpush.bf16.msra.mxu0 %v3025_v49  ;;  %v3200_v49 = vld [vmem:[#allocation2 + $0x1a0] sm:$0xf] }
  0xa5   :  { %v205_v1 = vrot.slane %v204_v53, 2  ;;  %v244_v2 = vadd.f32 %v243_v54, %v242_v48  ;;  %v195_v3 = vadd.f32 %v4628_v60, %v4612_v30  ;;  %v231_v4 = vmul.f32 %v4628_v60, %v4628_v60  ;;  %v4634_v5 = vpop.f32.mrf.mxu3  ;;  %1667 = vmatpush.bf16.msrb.mxu3 %v3225_v37  ;;  %v3072_v37 = vld [vmem:[#allocation2 + $0xa0] sm:$0xf] }
  0xa6   :  { %v216_v6 = vadd.f32 %v4634_v5, %v4616_v32  ;;  %v234_v7 = vmul.f32 %v4634_v5, %v4634_v5  ;;  %v3073_v52 = vor.u32 %v4154_v38, %v3072_v37  ;;  %v4212_v37 = vld [vmem:[#allocation2 + $0x274] sm:$0xf0]  ;;  %v3368_v38 = vld [vmem:[#allocation2 + $0x2f0] sm:$0xf] }
  0xa7   :  { %v206_v13 = vadd.f32 %v205_v1, %v204_v53  ;;  %v245_v14 = vrot.slane %v244_v2, 2  ;;  %v196_v15 = vrot.slane %v195_v3, 4  ;;  %v235_v16 = vadd.f32 %v231_v4, %v227_v58  ;;  %v4190_v58 = vld [vmem:[#allocation2 + $0x1c4] sm:$0xf0]  ;;  %v3080_v4 = vld [vmem:[#allocation2 + $0xb0] sm:$0xf] }
  0xa8   :  { %v217_v19 = vrot.slane %v216_v6, 4  ;;  %v256_v20 = vadd.f32 %v234_v7, %v230_v59  ;;  %v3217_v9 = vor.u32 %v4190_v58, %v3216_v57  ;;  %v4136_v57 = vld [vmem:[#allocation2 + $0x14] sm:$0xf0]  ;;  %v3064_v58 = vld [vmem:[#allocation2 + $0x90] sm:$0xf] }
  0xa9   :  { %v207_v25 = vrot.slane %v206_v13, 1  ;;  %v246_v26 = vadd.f32 %v245_v14, %v244_v2  ;;  %v197_v27 = vadd.f32 %v196_v15, %v195_v3  ;;  %v236_v28 = vrot.slane %v235_v16, 4  ;;  %v4140_v3 = vld [vmem:[#allocation2 + $0x34] sm:$0xf0] }
  0xaa   :  { %v218_v34 = vadd.f32 %v217_v19, %v216_v6  ;;  %v257_v35 = vrot.slane %v256_v20, 4  ;;  %v3017_v15 = vor.u32 %v4140_v3, %v3016_v62  ;;  %1668 = vmatpush.bf16.msrb.mxu3 %v3217_v9 }
  0xab   :  { %v208_v40 = vadd.f32 %v207_v25, %v206_v13  ;;  %v247_v41 = vrot.slane %v246_v26, 1  ;;  %v198_v42 = vrot.slane %v197_v27, 2  ;;  %v237_v43 = vadd.f32 %v236_v28, %v235_v16  ;;  %v4172_v16 = vld [vmem:[#allocation2 + $0x134] sm:$0xf0]  ;;  %v4138_v28 = vld [vmem:[#allocation2 + $0x24] sm:$0xf0] }
  0xac   :  { %v219_v46 = vrot.slane %v218_v34, 2  ;;  %v258_v47 = vadd.f32 %v257_v35, %v256_v20  ;;  %v4640_v48 = vpop.f32.mrf.mxu2  ;;  %v3081_v20 = vor.u32 %v4156_v10, %v3080_v4  ;;  %v3145_v21 = vor.u32 %v4172_v16, %v3144_v11  ;;  %1627 = vmatpush.bf16.msra.mxu0 %v3017_v15  ;;  %v4168_v4 = vld [vmem:[#allocation2 + $0x114] sm:$0xf0]  ;;  %v4134_v15 = vld [vmem:[#allocation2 + $0x4] sm:$0xf0] }
  0xad   :  { %v4642_v53 = vmul.f32 0.0625, %v208_v40  ;;  %v248_v54 = vadd.f32 %v247_v41, %v246_v26  ;;  %v199_v55 = vadd.f32 %v198_v42, %v197_v27  ;;  %v238_v56 = vrot.slane %v237_v43, 2  ;;  %v3136_v42 = vld [vmem:[#allocation2 + $0x120] sm:$0xf]  ;;  %v4184_v11 = vld [vmem:[#allocation2 + $0x194] sm:$0xf0] }
  0xae   :  { %v220_v59 = vadd.f32 %v219_v46, %v218_v34  ;;  %v259_v61 = vrot.slane %v258_v47, 2  ;;  %v3209_v27 = vor.u32 %v4188_v22, %v3208_v17  ;;  %1641 = vmatpush.bf16.msrb.mxu1 %v3081_v20  ;;  %v3009_v36 = vor.u32 %v4138_v28, %v3008_v23  ;;  %1655 = vmatpush.bf16.msra.mxu2 %v3145_v21  ;;  %v3056_v16 = vld [vmem:[#allocation2 + $0x80] sm:$0xf]  ;;  %v4150_v17 = vld [vmem:[#allocation2 + $0x84] sm:$0xf0] }
  0xaf   :  { %v264_v63 = vmul.f32 0.0625, %v248_v54  ;;  %v268_v0 = vmul.f32 %v4642_v53, %v4642_v53  ;;  %v200_v1 = vrot.slane %v199_v55, 1  ;;  %v239_v2 = vadd.f32 %v238_v56, %v237_v43  ;;  %v4170_v43 = vld [vmem:[#allocation2 + $0x124] sm:$0xf0]  ;;  %v3000_v56 = vld [vmem:[#allocation2 + $0x10] sm:$0xf] }
  0xb0   :  { %v221_v6 = vrot.slane %v220_v59, 1  ;;  %v260_v7 = vadd.f32 %v259_v61, %v258_v47  ;;  %v229_v41 = vmul.f32 %v4640_v48, %v4640_v48  ;;  %1669 = vmatpush.bf16.msrb.mxu3 %v3209_v27  ;;  %1628 = vmatpush.bf16.msra.mxu0 %v3009_v36  ;;  %v3137_v54 = vor.u32 %v4170_v43, %v3136_v42  ;;  %v4182_v27 = vld [vmem:[#allocation2 + $0x184] sm:$0xf0]  ;;  %v3304_v36 = vld [vmem:[#allocation2 + $0x270] sm:$0xf] }
  0xb1   :  { %v272_v12 = vsub.f32 %v264_v63, %v268_v0  ;;  %v201_v13 = vadd.f32 %v200_v1, %v199_v55  ;;  %v240_v14 = vrot.slane %v239_v2, 1  ;;  %v3201_v55 = vor.u32 %v4186_v50, %v3200_v49  ;;  %v4152_v0 = vld [vmem:[#allocation2 + $0x94] sm:$0xf0]  ;;  %v3128_v1 = vld [vmem:[#allocation2 + $0x110] sm:$0xf] }
  0xb2   :  { %v222_v18 = vadd.f32 %v221_v6, %v220_v59  ;;  %v261_v19 = vrot.slane %v260_v7, 1  ;;  %v3001_v63 = vor.u32 %v4136_v57, %v3000_v56  ;;  %1642 = vmatpush.bf16.msrb.mxu1 %v3073_v52  ;;  %v3065_v3 = vor.u32 %v4152_v0, %v3064_v58  ;;  %v3192_v6 = vld [vmem:[#allocation2 + $0x190] sm:$0xf]  ;;  %1656 = vmatpush.bf16.msra.mxu2 %v3137_v54  ;;  %v4228_v42 = vld [vmem:[#allocation2 + $0x2f4] sm:$0xf0] }
  0xb3   :  { %v4646_v24 = vadd.f32 1e-05, %v272_v12  ;;  %v4648_v25 = vmul.f32 0.0625, %v201_v13  ;;  %v241_v26 = vadd.f32 %v240_v14, %v239_v2  ;;  %v3129_v10 = vor.u32 %v4168_v4, %v3128_v1  ;;  %v2992_v14 = vld [vmem:[#allocation2] sm:$0xf] }
  0xb4   :  { %v4650_v31 = vmul.f32 0.0625, %v222_v18  ;;  %v262_v34 = vadd.f32 %v261_v19, %v260_v7  ;;  %v4652_v35 = vpop.f32.mrf.mxu2  ;;  %1670 = vmatpush.bf16.msrb.mxu3 %v3201_v55  ;;  %1629 = vmatpush.bf16.msra.mxu0 %v3001_v63  ;;  %v3193_v13 = vor.u32 %v4184_v11, %v3192_v6  ;;  %v3120_v18 = vld [vmem:[#allocation2 + $0x100] sm:$0xf]  ;;  %v4166_v19 = vld [vmem:[#allocation2 + $0x104] sm:$0xf0]  ;;  %v2993_v22 = vor.u32 %v4134_v15, %v2992_v14 }
  0xb5   :  { %4409 = vrsqrt.f32 %v4646_v24  ;;  %v263_v39 = vmul.f32 0.0625, %v241_v26  ;;  %v267_v40 = vmul.f32 %v4648_v25, %v4648_v25  ;;  %v209_v46 = vadd.f32 %v4652_v35, %v4640_v48  ;;  %v3184_v26 = vld [vmem:[#allocation2 + $0x180] sm:$0xf]  ;;  %v3432_v43 = vld [vmem:[#allocation2 + $0x370] sm:$0xf] }
  0xb6   :  { %v266_v44 = vmul.f32 0.0625, %v262_v34  ;;  %v270_v45 = vmul.f32 %v4650_v31, %v4650_v31  ;;  %v233_v47 = vmul.f32 %v4652_v35, %v4652_v35  ;;  %1643 = vmatpush.bf16.msrb.mxu1 %v3065_v3  ;;  %v3057_v23 = vor.u32 %v4150_v17, %v3056_v16  ;;  %1657 = vmatpush.bf16.msra.mxu2 %v3129_v10  ;;  %v4260_v54 = vld [vmem:[#allocation2 + $0x3f4] sm:$0xf0]  ;;  %v3296_v55 = vld [vmem:[#allocation2 + $0x260] sm:$0xf] }
  0xb7   :  { %v271_v51 = vsub.f32 %v263_v39, %v267_v40  ;;  %v210_v61 = vrot.slane %v209_v46, 4  ;;  %v3121_v28 = vor.u32 %v4166_v19, %v3120_v18  ;;  %v3185_v34 = vor.u32 %v4182_v27, %v3184_v26  ;;  %v4226_v0 = vld [vmem:[#allocation2 + $0x2e4] sm:$0xf0]  ;;  %v3424_v6 = vld [vmem:[#allocation2 + $0x360] sm:$0xf] }
  0xb8   :  { %v274_v59 = vsub.f32 %v266_v44, %v270_v45  ;;  %v249_v62 = vadd.f32 %v233_v47, %v229_v41  ;;  %1671 = vmatpush.bf16.msrb.mxu3 %v3193_v13  ;;  %1630 = vmatpush.bf16.msra.mxu0 %v2993_v22  ;;  %v3305_v41 = vor.u32 %v4212_v37, %v3304_v36  ;;  %v3496_v47 = vld [vmem:[#allocation2 + $0x3f0] sm:$0xf]  ;;  %v3488_v14 = vld [vmem:[#allocation2 + $0x3e0] sm:$0xf]  ;;  %v4258_v15 = vld [vmem:[#allocation2 + $0x3e4] sm:$0xf0]  ;;  %vm296_vm2 = vweird.f32 %v4646_v24 }
  0xb9   :  { %v4665_v2 = vadd.f32 1e-05, %v271_v51  ;;  %v211_v8 = vadd.f32 %v210_v61, %v209_v46  ;;  %v3369_v45 = vor.u32 %v4228_v42, %v3368_v38  ;;  %v4244_v46 = vld [vmem:[#allocation2 + $0x374] sm:$0xf0]  ;;  %v3497_v58 = vor.u32 %v4260_v54, %v3496_v47  ;;  %v3360_v61 = vld [vmem:[#allocation2 + $0x2e0] sm:$0xf] }
  0xba   :  { %v4667_v7 = vadd.f32 1e-05, %v274_v59  ;;  %v250_v9 = vrot.slane %v249_v62, 4  ;;  %1644 = vmatpush.bf16.msrb.mxu1 %v3057_v23  ;;  %v3433_v52 = vor.u32 %v4244_v46, %v3432_v43  ;;  %1658 = vmatpush.bf16.msra.mxu2 %v3121_v28  ;;  %v4210_v59 = vld [vmem:[#allocation2 + $0x264] sm:$0xf0]  ;;  %v3361_v4 = vor.u32 %v4226_v0, %v3360_v61 }
  0xbb   :  { %v4669_v12 = vpop.eup %4409  ;;  %4411 = vrsqrt.f32 %v4665_v2  ;;  %v212_v20 = vrot.slane %v211_v8, 2  ;;  %v3297_v3 = vor.u32 %v4210_v59, %v3296_v55  ;;  %v3489_v17 = vor.u32 %v4258_v15, %v3488_v14  ;;  %v3288_v18 = vld [vmem:[#allocation2 + $0x250] sm:$0xf]  ;;  %v4208_v19 = vld [vmem:[#allocation2 + $0x254] sm:$0xf0] }
  0xbc   :  { %4413 = vrsqrt.f32 %v4667_v7  ;;  %v251_v21 = vadd.f32 %v250_v9, %v249_v62  ;;  %v291_v44 = vmul.f32 %v4669_v12, %v4646_v24  ;;  %1679 = vmatpush.bf16.msrb.mxu0 %v3305_v41  ;;  %1672 = vmatpush.bf16.msrb.mxu3 %v3185_v34  ;;  %v3352_v22 = vld [vmem:[#allocation2 + $0x2d0] sm:$0xf]  ;;  %v3289_v23 = vor.u32 %v4208_v19, %v3288_v18  ;;  %v4224_v26 = vld [vmem:[#allocation2 + $0x2d4] sm:$0xf0]  ;;  %v3280_v43 = vld [vmem:[#allocation2 + $0x240] sm:$0xf] }
  0xbd   :  { %v213_v39 = vadd.f32 %v212_v20, %v211_v8  ;;  %v4242_v8 = vld [vmem:[#allocation2 + $0x364] sm:$0xf0]  ;;  %v3416_v27 = vld [vmem:[#allocation2 + $0x350] sm:$0xf]  ;;  %v3353_v37 = vor.u32 %v4224_v26, %v3352_v22  ;;  %v4240_v38 = vld [vmem:[#allocation2 + $0x354] sm:$0xf0]  ;;  %vm297_vm3 = vweird.f32 %v4669_v12  ;;  %vm316_vm6 = vweird.f32 %v4667_v7 }
  0xbe   :  { %v252_v40 = vrot.slane %v251_v21, 2  ;;  %1693 = vmatpush.bf16.msra.mxu1 %v3369_v45  ;;  %1707 = vmatpush.bf16.msrb.mxu2 %v3433_v52  ;;  %v292_v1 = vmul.f32 %v4669_v12, %v291_v44  ;;  %v3425_v13 = vor.u32 %v4242_v8, %v3424_v6  ;;  %v3417_v41 = vor.u32 %v4240_v38, %v3416_v27  ;;  %v4256_v42 = vld [vmem:[#allocation2 + $0x3d4] sm:$0xf0]  ;;  %v4206_v44 = vld [vmem:[#allocation2 + $0x244] sm:$0xf0]  ;;  %vm4715_vm7 = vmor %vm296_vm2, %vm297_vm3 }
  0xbf   :  { %v214_v50 = vrot.slane %v213_v39, 1  ;;  %v3281_v47 = vor.u32 %v4206_v44, %v3280_v43  ;;  %v3408_v54 = vld [vmem:[#allocation2 + $0x340] sm:$0xf]  ;;  %v4238_v55 = vld [vmem:[#allocation2 + $0x344] sm:$0xf0]  ;;  %vm286_vm9 = vweird.f32 %v4665_v2  ;;  %vm4483_vm3 = vmmov 1  }
  0xc0   :  { %v253_v51 = vadd.f32 %v252_v40, %v251_v21  ;;  %1721 = vmatpush.bf16.msra.mxu3 %v3497_v58  ;;  %1680 = vmatpush.bf16.msrb.mxu0 %v3297_v3  ;;  %v4689_v28 = vmul.f32 0.5, %v292_v1  ;;  %v4254_v58 = vld [vmem:[#allocation2 + $0x3c4] sm:$0xf0]  ;;  %v3272_v59 = vld [vmem:[#allocation2 + $0x230] sm:$0xf] }
  0xc1   :  { %v4675_v49 = vpop.eup %4411  ;;  %v215_v62 = vadd.f32 %v214_v50, %v213_v39  ;;  %v3480_v39 = vld [vmem:[#allocation2 + $0x3d0] sm:$0xf]  ;;  %v3344_v50 = vld [vmem:[#allocation2 + $0x2c0] sm:$0xf]  ;;  %v4204_v61 = vld [vmem:[#allocation2 + $0x234] sm:$0xf0] }
  0xc2   :  { %v4677_v56 = vpop.eup %4413  ;;  %v281_v57 = vmul.f32 %v4675_v49, %v4665_v2  ;;  %v254_v63 = vrot.slane %v253_v51, 1  ;;  %1694 = vmatpush.bf16.msra.mxu1 %v3361_v4  ;;  %1708 = vmatpush.bf16.msrb.mxu2 %v3425_v13  ;;  %v3481_v46 = vor.u32 %v4256_v42, %v3480_v39  ;;  %v3273_v1 = vor.u32 %v4204_v61, %v3272_v59  ;;  %v3336_v3 = vld [vmem:[#allocation2 + $0x2b0] sm:$0xf]  ;;  %v4220_v4 = vld [vmem:[#allocation2 + $0x2b4] sm:$0xf0] }
  0xc3   :  { %v4683_v10 = vmul.f32 0.0625, %v215_v62  ;;  %v311_v16 = vmul.f32 %v4677_v56, %v4667_v7  ;;  %v3337_v6 = vor.u32 %v4220_v4, %v3336_v3  ;;  %v3400_v8 = vld [vmem:[#allocation2 + $0x330] sm:$0xf]  ;;  %v4252_v14 = vld [vmem:[#allocation2 + $0x3b4] sm:$0xf0]  ;;  %vm317_vm4 = vweird.f32 %v4677_v56 }
  0xc4   :  { %v282_v9 = vmul.f32 %v4675_v49, %v281_v57  ;;  %v255_v11 = vadd.f32 %v254_v63, %v253_v51  ;;  %1722 = vmatpush.bf16.msra.mxu3 %v3489_v17  ;;  %1681 = vmatpush.bf16.msrb.mxu0 %v3289_v23  ;;  %v4222_v51 = vld [vmem:[#allocation2 + $0x2c4] sm:$0xf0]  ;;  %v3472_v57 = vld [vmem:[#allocation2 + $0x3c0] sm:$0xf]  ;;  %v3409_v63 = vor.u32 %v4238_v55, %v3408_v54  ;;  %v3256_v38 = vld [vmem:[#allocation2 + $0x210] sm:$0xf]  ;;  %vm287_vm5 = vweird.f32 %v4675_v49 }
  0xc5   :  { %v269_v21 = vmul.f32 %v4683_v10, %v4683_v10  ;;  %v312_v40 = vmul.f32 %v4677_v56, %v311_v16  ;;  %v3345_v52 = vor.u32 %v4222_v51, %v3344_v50  ;;  %v3473_v0 = vor.u32 %v4254_v58, %v3472_v57  ;;  %v3264_v15 = vld [vmem:[#allocation2 + $0x220] sm:$0xf]  ;;  %v4202_v16 = vld [vmem:[#allocation2 + $0x224] sm:$0xf0]  ;;  %v4200_v39 = vld [vmem:[#allocation2 + $0x214] sm:$0xf0] }
  0xc6   :  { %v265_v20 = vmul.f32 0.0625, %v255_v11  ;;  %v4691_v34 = vmul.f32 0.5, %v282_v9  ;;  %1695 = vmatpush.bf16.msra.mxu1 %v3353_v37  ;;  %1709 = vmatpush.bf16.msrb.mxu2 %v3417_v41  ;;  %v4236_v9 = vld [vmem:[#allocation2 + $0x334] sm:$0xf0]  ;;  %v3464_v11 = vld [vmem:[#allocation2 + $0x3b0] sm:$0xf]  ;;  %vm4729_vm10 = vmor %vm316_vm6, %vm317_vm4 }
  0xc7   :  { %v313_v62 = vmul.f32 0.5, %v312_v40  ;;  %v3401_v13 = vor.u32 %v4236_v9, %v3400_v8  ;;  %v3465_v17 = vor.u32 %v4252_v14, %v3464_v11  ;;  %v3328_v18 = vld [vmem:[#allocation2 + $0x2a0] sm:$0xf]  ;;  %v4218_v19 = vld [vmem:[#allocation2 + $0x2a4] sm:$0xf0]  ;;  %vm4735_vm11 = vmor %vm286_vm9, %vm287_vm5 }
  0xc8   :  { %v273_v36 = vsub.f32 %v265_v20, %v269_v21  ;;  %1723 = vmatpush.bf16.msra.mxu3 %v3481_v46  ;;  %1682 = vmatpush.bf16.msrb.mxu0 %v3281_v47  ;;  %v3392_v20 = vld [vmem:[#allocation2 + $0x320] sm:$0xf]  ;;  %v3265_v21 = vor.u32 %v4202_v16, %v3264_v15  ;;  %v4234_v22 = vld [vmem:[#allocation2 + $0x324] sm:$0xf0]  ;;  %v3329_v37 = vor.u32 %v4218_v19, %v3328_v18  ;;  %v3320_v43 = vld [vmem:[#allocation2 + $0x290] sm:$0xf] }
  0xc9   :  { %v3456_v23 = vld [vmem:[#allocation2 + $0x3a0] sm:$0xf]  ;;  %v4250_v26 = vld [vmem:[#allocation2 + $0x3a4] sm:$0xf0]  ;;  %v314_v40 = vsub.f32 1.5, %v313_v62  ;;  %v3393_v42 = vor.u32 %v4234_v22, %v3392_v20  ;;  %v284_v51 = vsub.f32 1.5, %v4691_v34 }
  0xca   :  { %v4694_v45 = vadd.f32 1e-05, %v273_v36  ;;  %1696 = vmatpush.bf16.msra.mxu1 %v3345_v52  ;;  %1710 = vmatpush.bf16.msrb.mxu2 %v3409_v63  ;;  %v294_v36 = vsub.f32 1.5, %v4689_v28  ;;  %v4216_v44 = vld [vmem:[#allocation2 + $0x294] sm:$0xf0]  ;;  %v3457_v46 = vor.u32 %v4250_v26, %v3456_v23  ;;  %v3257_v52 = vor.u32 %v4200_v39, %v3256_v38 }
  0xcb   :  { %v3384_v47 = vld [vmem:[#allocation2 + $0x310] sm:$0xf]  ;;  %v4232_v50 = vld [vmem:[#allocation2 + $0x314] sm:$0xf0]  ;;  %v3321_v58 = vor.u32 %v4216_v44, %v3320_v43  ;;  %v3248_v59 = vld [vmem:[#allocation2 + $0x200] sm:$0xf]  ;;  %v315_v62 = vmul.f32 %v4677_v56, %v314_v40  ;;  %v285_v9 = vmul.f32 %v4675_v49, %v284_v51 }
  0xcc   :  { %4415 = vrsqrt.f32 %v4694_v45  ;;  %1724 = vmatpush.bf16.msra.mxu3 %v3473_v0  ;;  %1683 = vmatpush.bf16.msrb.mxu0 %v3273_v1  ;;  %v3448_v54 = vld [vmem:[#allocation2 + $0x390] sm:$0xf]  ;;  %v4248_v55 = vld [vmem:[#allocation2 + $0x394] sm:$0xf0]  ;;  %v295_v57 = vmul.f32 %v4669_v12, %v294_v36  ;;  %v4198_v61 = vld [vmem:[#allocation2 + $0x204] sm:$0xf0]  ;;  %v3385_v63 = vor.u32 %v4232_v50, %v3384_v47  ;;  %vm306_vm12 = vweird.f32 %v4694_v45 }
  0xcd   :  { %v3312_v0 = vld [vmem:[#allocation2 + $0x280] sm:$0xf]  ;;  %v4214_v1 = vld [vmem:[#allocation2 + $0x284] sm:$0xf0]  ;;  %v3449_v3 = vor.u32 %v4248_v55, %v3448_v54  ;;  %v319_v2 = vsel %vm4729_vm10, %v4677_v56, %v315_v62  ;;  %v289_v20 = vsel %vm4735_vm11, %v4675_v49, %v285_v9  ;;  %v3560_v8 = vld [vmem:[#allocation2 + $0x470] sm:$0xf] }
  0xce   :  { %1697 = vmatpush.bf16.msra.mxu1 %v3337_v6  ;;  %1711 = vmatpush.bf16.msrb.mxu2 %v3401_v13  ;;  %v3376_v4 = vld [vmem:[#allocation2 + $0x300] sm:$0xf]  ;;  %v4230_v6 = vld [vmem:[#allocation2 + $0x304] sm:$0xf0]  ;;  %v3249_v13 = vor.u32 %v4198_v61, %v3248_v59  ;;  %v299_v16 = vsel %vm4715_vm7, %v4669_v12, %v295_v57  ;;  %v326_v22 = vrot.slane %v319_v2, 5 }
  0xcf   :  { %v3440_v14 = vld [vmem:[#allocation2 + $0x380] sm:$0xf]  ;;  %v4246_v15 = vld [vmem:[#allocation2 + $0x384] sm:$0xf0]  ;;  %v3377_v7 = vor.u32 %v4230_v6, %v3376_v4  ;;  %v324_v56 = vrot.slane %v299_v16, 7 }
  0xd0   :  { %1725 = vmatpush.bf16.msra.mxu3 %v3465_v17  ;;  %1684 = vmatpush.bf16.msrb.mxu0 %v3265_v21  ;;  %v3313_v17 = vor.u32 %v4214_v1, %v3312_v0  ;;  %v3441_v19 = vor.u32 %v4246_v15, %v3440_v14  ;;  %v3624_v14 = vld [vmem:[#allocation2 + $0x4f0] sm:$0xf]  ;;  %v4292_v15 = vld [vmem:[#allocation2 + $0x4f4] sm:$0xf0] }
  0xd1   :  { %v328_v26 = vsel %vm327_vm14, %v289_v20, %v324_v56  ;;  %v3688_v20 = vld [vmem:[#allocation2 + $0x570] sm:$0xf] }
  0xd2   :  { %v4697_v27 = vpop.eup %4415  ;;  %1698 = vmatpush.bf16.msra.mxu1 %v3329_v37  ;;  %1712 = vmatpush.bf16.msrb.mxu2 %v3393_v42  ;;  %v394_v37 = vlaneseq }
  0xd3   :  { %v301_v41 = vmul.f32 %v4697_v27, %v4694_v45  ;;  %vm307_vm8 = vweird.f32 %v4697_v27  ;;  %v275_v45 = vld [vmem:[%s5168_s2] sm:$0xf] }
  0xd4   :  { %1726 = vmatpush.bf16.msra.mxu3 %v3457_v46  ;;  %1685 = vmatpush.bf16.msrb.mxu0 %v3257_v52  ;;  %vm308_vm13 = vmor %vm306_vm12, %vm307_vm8  ;;  %v4759_v46 = vshrl.u32 %v394_v37, 7  ;;  %v335_v52 = vld [vmem:[%s5169_s3] sm:$0xf]  ;;  %v3752_v37 = vld [vmem:[#allocation2 + $0x5f0] sm:$0xf] }
  0xd5   :  { %v302_v28 = vmul.f32 %v4697_v27, %v301_v41 }
  0xd6   :  { %1699 = vmatpush.bf16.msra.mxu1 %v3321_v58  ;;  %1713 = vmatpush.bf16.msrb.mxu2 %v3385_v63  ;;  %vm397_vm1 = vcmp.gt.s32.totalorder %v4759_v46, 0  ;;  %vm407_vm2 = vcmp.lt.s32.totalorder %v4759_v46, 1  ;;  %vm438_vm5 = vcmp.lt.s32.totalorder %v4759_v46, 7 }
  0xd7   :  { %v303_v34 = vmul.f32 0.5, %v302_v28  ;;  %vm4813_vm4 = vmpackc.low %vm4483_vm3, %vm397_vm1  ;;  %vm2854_vm1 = vcmask 523264  }
  0xd8   :  { %1727 = vmatpush.bf16.msra.mxu3 %v3449_v3  ;;  %1686 = vmatpush.bf16.msrb.mxu0 %v3249_v13  ;;  %v4276_v13 = vld [vmem:[#allocation2 + $0x474] sm:$0xf0] }
  0xd9   :  { %v304_v11 = vsub.f32 1.5, %v303_v34 }
  0xda   :  { %1700 = vmatpush.bf16.msra.mxu1 %v3313_v17  ;;  %1714 = vmatpush.bf16.msrb.mxu2 %v3377_v7  ;;  %v3561_v7 = vor.u32 %v4276_v13, %v3560_v8  ;;  %v3736_v8 = vld [vmem:[#allocation2 + $0x5d0] sm:$0xf]  ;;  %v4270_v13 = vld [vmem:[#allocation2 + $0x444] sm:$0xf0] }
  0xdb   :  { %v305_v12 = vmul.f32 %v4697_v27, %v304_v11 }
  0xdc   :  { %1728 = vmatpush.bf16.msra.mxu3 %v3441_v19  ;;  %v3625_v19 = vor.u32 %v4292_v15, %v3624_v14 }
  0xdd   :  { %v309_v21 = vsel %vm308_vm13, %v4697_v27, %v305_v12 }
  0xde   :  { %v325_v23 = vrot.slane %v309_v21, 6 }
  0xe0   :  { %v330_v36 = vsel %vm329_vm15, %v325_v23, %v326_v22 }
  0xe1   :  { %v332_v49 = vsel %vm331_vm0, %v328_v26, %v330_v36 }
  0xe2   :  { %v334_v27 = vmul.f32 %v332_v49, %v275_v45  ;;  %v4308_v45 = vld [vmem:[#allocation2 + $0x574] sm:$0xf0] }
  0xe4   :  { %v337_v38 = vperm.slane %v334_v27, 0  ;;  %v338_v39 = vperm.slane %v334_v27, 1  ;;  %v339_v40 = vperm.slane %v334_v27, 2  ;;  %v340_v41 = vperm.slane %v334_v27, 3 }
  0xe6   :  { %v346_v42 = vmul.f32 %v338_v39, %v4642_v53  ;;  %v347_v43 = vmul.f32 %v339_v40, %v4683_v10  ;;  %v348_v44 = vmul.f32 %v340_v41, %v4650_v31  ;;  %v345_v47 = vmul.f32 %v337_v38, %v4648_v25 }
  0xe7   :  { %v363_v25 = vmul.f32 %v339_v40, %v4640_v48  ;;  %v367_v31 = vmul.f32 %v339_v40, %v4652_v35  ;;  %v361_v57 = vmul.f32 %v337_v38, %v4612_v30  ;;  %v365_v58 = vmul.f32 %v337_v38, %v4628_v60  ;;  %v4324_v38 = vld [vmem:[#allocation2 + $0x5f4] sm:$0xf0] }
  0xe8   :  { %v353_v50 = vrot.slane %v346_v42, 7  ;;  %v354_v51 = vrot.slane %v347_v43, 6  ;;  %v355_v28 = vrot.slane %v348_v44, 5  ;;  %v362_v63 = vmul.f32 %v338_v39, %v4610_v29 }
  0xe9   :  { %v366_v0 = vmul.f32 %v338_v39, %v4618_v33  ;;  %v364_v1 = vmul.f32 %v340_v41, %v4616_v32  ;;  %v368_v3 = vmul.f32 %v340_v41, %v4634_v5  ;;  %v4397_v41 = vld [vmem:[%s5179_s13] sm:$0xff] }
  0xea   :  { %v356_v54 = vsel %vm327_vm14, %v345_v47, %v353_v50  ;;  %v357_v55 = vsel %vm329_vm15, %v354_v51, %v355_v28  ;;  %v3552_v28 = vld [vmem:[#allocation2 + $0x460] sm:$0xf] }
  0xeb   :  { %v358_v53 = vsel %vm331_vm0, %v356_v54, %v357_v55  ;;  %v3689_v55 = vor.u32 %v4308_v45, %v3688_v20  ;;  %v3728_v20 = vld [vmem:[#allocation2 + $0x5c0] sm:$0xf]  ;;  %v4268_v45 = vld [vmem:[#allocation2 + $0x434] sm:$0xf0] }
  0xec   :  { %v360_v10 = vsub.f32 %v335_v52, %v358_v53  ;;  %v4274_v52 = vld [vmem:[#allocation2 + $0x464] sm:$0xf0]  ;;  %v3753_v53 = vor.u32 %v4324_v38, %v3752_v37  ;;  %v3656_v37 = vld [vmem:[#allocation2 + $0x530] sm:$0xf]  ;;  %v4300_v38 = vld [vmem:[#allocation2 + $0x534] sm:$0xf0] }
  0xee   :  { %v372_v59 = vperm.slane %v360_v10, 2  ;;  %v370_v61 = vperm.slane %v360_v10, 0  ;;  %v371_v62 = vperm.slane %v360_v10, 1  ;;  %v373_v34 = vperm.slane %v360_v10, 3  ;;  %v3616_v10 = vld [vmem:[#allocation2 + $0x4e0] sm:$0xf] }
  0xf0   :  { %v380_v4 = vadd.f32 %v372_v59, %v363_v25  ;;  %v384_v48 = vadd.f32 %v372_v59, %v367_v31  ;;  %v378_v6 = vadd.f32 %v370_v61, %v361_v57  ;;  %v382_v35 = vadd.f32 %v370_v61, %v365_v58  ;;  %v4290_v25 = vld [vmem:[#allocation2 + $0x4e4] sm:$0xf0]  ;;  %v3680_v31 = vld [vmem:[#allocation2 + $0x560] sm:$0xf] }
  0xf1   :  { %v379_v30 = vadd.f32 %v371_v62, %v362_v63  ;;  %v383_v9 = vadd.f32 %v371_v62, %v366_v0  ;;  %v381_v60 = vadd.f32 %v373_v34, %v364_v1  ;;  %v385_v11 = vadd.f32 %v373_v34, %v368_v3  ;;  %v4306_v58 = vld [vmem:[#allocation2 + $0x564] sm:$0xf0]  ;;  %v3744_v59 = vld [vmem:[#allocation2 + $0x5e0] sm:$0xf]  ;;  %v3544_v63 = vld [vmem:[#allocation2 + $0x450] sm:$0xf] }
  0xf2   :  { %v4778_v16 = vmax.f32 %v380_v4, 0.0  ;;  %v4780_v29 = vmax.f32 %v384_v48, 0.0  ;;  %v4782_v33 = vmax.f32 %v378_v6, 0.0  ;;  %v4784_v32 = vmax.f32 %v382_v35, 0.0  ;;  %v4322_v61 = vld [vmem:[#allocation2 + $0x5e4] sm:$0xf0] }
  0xf3   :  { %v4786_v5 = vmax.f32 %v379_v30, 0.0  ;;  %v4788_v24 = vmax.f32 %v383_v9, 0.0  ;;  %v4790_v17 = vmax.f32 %v381_v60, 0.0  ;;  %v4792_v18 = vmax.f32 %v385_v11, 0.0  ;;  %v4272_v0 = vld [vmem:[#allocation2 + $0x454] sm:$0xf0] }
  0xf4   :  { %v401_v2 = vrot.slane %v4778_v16, 7  ;;  %v405_v12 = vrot.slane %v4780_v29, 7  ;;  %v399_v21 = vrot.slane %v4782_v33, 7  ;;  %v403_v56 = vrot.slane %v4784_v32, 7  ;;  %v3608_v4 = vld [vmem:[#allocation2 + $0x4d0] sm:$0xf] }
  0xf5   :  { %v400_v22 = vrot.slane %v4786_v5, 7  ;;  %v404_v23 = vrot.slane %v4788_v24, 7  ;;  %v402_v49 = vrot.slane %v4790_v17, 7  ;;  %v406_v27 = vrot.slane %v4792_v18, 7  ;;  %v4288_v48 = vld [vmem:[#allocation2 + $0x4d4] sm:$0xf0] }
  0xf6   :  { %v410_v26 = vsel %vm407_vm2, %v401_v2, %v405_v12  ;;  %v414_v36 = vsel %vm407_vm2, %v405_v12, %v401_v2  ;;  %v408_v39 = vsel %vm407_vm2, %v399_v21, %v403_v56  ;;  %v412_v40 = vsel %vm407_vm2, %v403_v56, %v399_v21  ;;  %v3672_v6 = vld [vmem:[#allocation2 + $0x550] sm:$0xf]  ;;  %v4304_v35 = vld [vmem:[#allocation2 + $0x554] sm:$0xf0]  ;;  %v3536_v11 = vld [vmem:[#allocation2 + $0x440] sm:$0xf] }
  0xf7   :  { %v409_v42 = vsel %vm407_vm2, %v400_v22, %v404_v23  ;;  %v413_v43 = vsel %vm407_vm2, %v404_v23, %v400_v22  ;;  %v4821_v44 = vpack.c.bf16 %v408_v39, %v412_v40  ;;  %v4825_v50 = vpack.c.bf16 %v410_v26, %v414_v36  ;;  %v4320_v30 = vld [vmem:[#allocation2 + $0x5d4] sm:$0xf0]  ;;  %v3600_v2 = vld [vmem:[#allocation2 + $0x4c0] sm:$0xf]  ;;  %v4286_v12 = vld [vmem:[#allocation2 + $0x4c4] sm:$0xf0] }
  0xf8   :  { %v4823_v47 = vpack.c.bf16 %v409_v42, %v413_v43  ;;  %v411_v51 = vsel %vm407_vm2, %v402_v49, %v406_v27  ;;  %v415_v54 = vsel %vm407_vm2, %v406_v27, %v402_v49  ;;  %v3553_v62 = vor.u32 %v4274_v52, %v3552_v28  ;;  %v4318_v21 = vld [vmem:[#allocation2 + $0x5c4] sm:$0xf0]  ;;  %v3528_v23 = vld [vmem:[#allocation2 + $0x430] sm:$0xf]  ;;  %v4284_v27 = vld [vmem:[#allocation2 + $0x4b4] sm:$0xf0] }
  0xf9   :  { %3760 = vmatmul.msk.bf16.vlgmr.msra.gmra.mxu0 %vm4813_vm4, %v4821_v44  ;;  %v4837_v57 = vpack.c.bf16 %v411_v51, %v415_v54  ;;  %3766 = vmatmul.msk.bf16.vlgmr.msra.gmra.mxu2 %vm4813_vm4, %v4825_v50  ;;  %v3617_v34 = vor.u32 %v4290_v25, %v3616_v10  ;;  %v3681_v1 = vor.u32 %v4306_v58, %v3680_v31  ;;  %v3592_v49 = vld [vmem:[#allocation2 + $0x4b0] sm:$0xf]  ;;  %v4316_v40 = vld [vmem:[#allocation2 + $0x5b4] sm:$0xf0]  ;;  %v3520_v52 = vld [vmem:[#allocation2 + $0x420] sm:$0xf] }
  0xfa   :  { %3763 = vmatmul.msk.bf16.vlgmr.msrb.gmra.mxu1 %vm4813_vm4, %v4823_v47  ;;  %1735 = vmatpush.bf16.msra.mxu0 %v3561_v7  ;;  %v3745_v3 = vor.u32 %v4322_v61, %v3744_v59  ;;  %v3545_v9 = vor.u32 %v4272_v0, %v3544_v63  ;;  %v3609_v60 = vor.u32 %v4288_v48, %v3608_v4  ;;  %v3664_v7 = vld [vmem:[#allocation2 + $0x540] sm:$0xf]  ;;  %v3720_v39 = vld [vmem:[#allocation2 + $0x5b0] sm:$0xf]  ;;  %v4266_v54 = vld [vmem:[#allocation2 + $0x424] sm:$0xf0] }
  0xfb   :  { %3769 = vmatmul.msk.bf16.vlgmr.msrb.gmra.mxu3 %vm4813_vm4, %v4837_v57  ;;  %1749 = vmatpush.bf16.msrb.mxu1 %v3625_v19  ;;  %v3673_v14 = vor.u32 %v4304_v35, %v3672_v6  ;;  %v3737_v15 = vor.u32 %v4320_v30, %v3736_v8  ;;  %v4302_v19 = vld [vmem:[#allocation2 + $0x544] sm:$0xf0]  ;;  %v3537_v56 = vor.u32 %v4270_v13, %v3536_v11  ;;  %v3584_v25 = vld [vmem:[#allocation2 + $0x4a0] sm:$0xf]  ;;  %v3512_v0 = vld [vmem:[#allocation2 + $0x410] sm:$0xf] }
  0xfc   :  { %1763 = vmatpush.bf16.msra.mxu2 %v3689_v55  ;;  %1777 = vmatpush.bf16.msrb.mxu3 %v3753_v53  ;;  %v3601_v22 = vor.u32 %v4286_v12, %v3600_v2  ;;  %v3665_v26 = vor.u32 %v4302_v19, %v3664_v7  ;;  %v3729_v36 = vor.u32 %v4318_v21, %v3728_v20  ;;  %v4282_v31 = vld [vmem:[#allocation2 + $0x4a4] sm:$0xf0]  ;;  %v3648_v58 = vld [vmem:[#allocation2 + $0x520] sm:$0xf]  ;;  %v3576_v4 = vld [vmem:[#allocation2 + $0x490] sm:$0xf] }
  0xfd   :  { %v3529_v42 = vor.u32 %v4268_v45, %v3528_v23  ;;  %v4847_v43 = vpack.c.bf16 %v4784_v32, %v4782_v33  ;;  %v4851_v51 = vpack.c.bf16 %v4788_v24, %v4786_v5  ;;  %v3593_v28 = vor.u32 %v4284_v27, %v3592_v49  ;;  %v4298_v61 = vld [vmem:[#allocation2 + $0x524] sm:$0xf0]  ;;  %v4280_v48 = vld [vmem:[#allocation2 + $0x494] sm:$0xf0]  ;;  %v3640_v6 = vld [vmem:[#allocation2 + $0x510] sm:$0xf] }
  0xfe   :  { %1736 = vmatpush.bf16.msra.mxu0 %v3553_v62  ;;  %v4855_v55 = vpack.c.bf16 %v4780_v29, %v4778_v16  ;;  %v3657_v53 = vor.u32 %v4300_v38, %v3656_v37  ;;  %v3721_v10 = vor.u32 %v4316_v40, %v3720_v39  ;;  %v4861_v59 = vpack.c.bf16 %v4792_v18, %v4790_v17  ;;  %v3712_v62 = vld [vmem:[#allocation2 + $0x5a0] sm:$0xf]  ;;  %v4296_v30 = vld [vmem:[#allocation2 + $0x514] sm:$0xf0]  ;;  %v4262_v13 = vld [vmem:[#allocation2 + $0x404] sm:$0xf0] }
  0xff   :  { %1750 = vmatpush.bf16.msrb.mxu1 %v3617_v34  ;;  %v4314_v34 = vld [vmem:[#allocation2 + $0x5a4] sm:$0xf0]  ;;  %v3521_v63 = vor.u32 %v4266_v54, %v3520_v52  ;;  %v3649_v35 = vor.u32 %v4298_v61, %v3648_v58  ;;  %v3504_v11 = vld [vmem:[#allocation2 + $0x400] sm:$0xf]  ;;  %v3577_v19 = vor.u32 %v4280_v48, %v3576_v4  ;;  %v4163_v23 = vld [vmem:[#allocation2 + $0xf4] sm:$0xf]  ;;  %v3641_v45 = vor.u32 %v4296_v30, %v3640_v6 }
 0x100   :  { %1764 = vmatpush.bf16.msra.mxu2 %v3681_v1  ;;  %1778 = vmatpush.bf16.msrb.mxu3 %v3745_v3  ;;  %v4264_v1 = vld [vmem:[#allocation2 + $0x414] sm:$0xf0]  ;;  %v3585_v3 = vor.u32 %v4282_v31, %v3584_v25  ;;  %v3713_v8 = vor.u32 %v4314_v34, %v3712_v62  ;;  %v4278_v2 = vld [vmem:[#allocation2 + $0x484] sm:$0xf0]  ;;  %v3632_v12 = vld [vmem:[#allocation2 + $0x500] sm:$0xf]  ;;  %v3505_v54 = vor.u32 %v4262_v13, %v3504_v11 }
 0x101   :  { %v4294_v7 = vld [vmem:[#allocation2 + $0x504] sm:$0xf0]  ;;  %v3696_v20 = vld [vmem:[#allocation2 + $0x580] sm:$0xf]  ;;  %v4179_v49 = vld [vmem:[#allocation2 + $0x174] sm:$0xf] }
 0x102   :  { %1737 = vmatpush.bf16.msra.mxu0 %v3545_v9  ;;  %v3704_v9 = vld [vmem:[#allocation2 + $0x590] sm:$0xf]  ;;  %v4310_v21 = vld [vmem:[#allocation2 + $0x584] sm:$0xf0]  ;;  %v396_v27 = vadd.s32 8, %v4759_v46  ;;  %v430_v38 = vrot.slane %v4782_v33, 1 }
 0x103   :  { %1751 = vmatpush.bf16.msrb.mxu1 %v3609_v60  ;;  %v4312_v60 = vld [vmem:[#allocation2 + $0x594] sm:$0xf0]  ;;  %v3178_v37 = vld [vmem:[#allocation2 + $0x178] sm:$0xf0]  ;;  %v434_v39 = vrot.slane %v4784_v32, 1  ;;  %v431_v40 = vrot.slane %v4786_v5, 1  ;;  %v3697_v5 = vor.u32 %v4310_v21, %v3696_v20 }
 0x104   :  { %1765 = vmatpush.bf16.msra.mxu2 %v3673_v14  ;;  %1779 = vmatpush.bf16.msrb.mxu3 %v3737_v15  ;;  %v3568_v14 = vld [vmem:[#allocation2 + $0x480] sm:$0xf]  ;;  %v3513_v15 = vor.u32 %v4264_v1, %v3512_v0  ;;  %v436_v52 = vrot.slane %v4780_v29, 1  ;;  %v4195_v31 = vld [vmem:[#allocation2 + $0x1f4] sm:$0xf]  ;;  %v433_v33 = vrot.slane %v4790_v17, 1  ;;  %v3181_v61 = vor.u32 %v4179_v49, %v3178_v37 }
 0x105   :  { %v3242_v58 = vld [vmem:[#allocation2 + $0x1f8] sm:$0xf0]  ;;  %v437_v32 = vrot.slane %v4792_v18, 1  ;;  %vm429_vm6 = vcmp.lt.s32.totalorder %v396_v27, 15  ;;  %v443_v29 = vsel %vm438_vm5, %v434_v39, %v430_v38  ;;  %v4145_v34 = vld [vmem:[#allocation2 + $0x64] sm:$0xf] }
 0x106   :  { %1738 = vmatpush.bf16.msra.mxu0 %v3537_v56  ;;  %v4147_v56 = vld [vmem:[#allocation2 + $0x74] sm:$0xf]  ;;  %v3042_v18 = vld [vmem:[#allocation2 + $0x68] sm:$0xf0]  ;;  %v3245_v0 = vor.u32 %v4195_v31, %v3242_v58  ;;  %v4177_v48 = vld [vmem:[#allocation2 + $0x164] sm:$0xf] }
 0x107   :  { %1752 = vmatpush.bf16.msrb.mxu1 %v3601_v22  ;;  %v3050_v22 = vld [vmem:[#allocation2 + $0x78] sm:$0xf0]  ;;  %v3106_v4 = vld [vmem:[#allocation2 + $0xe8] sm:$0xf0]  ;;  %vm4889_vm7 = vmpackc.low %vm429_vm6, %vm4483_vm3  ;;  %v446_v30 = vsel %vm438_vm5, %v437_v32, %v433_v33 }
 0x108   :  { %1766 = vmatpush.bf16.msra.mxu2 %v3665_v26  ;;  %1780 = vmatpush.bf16.msrb.mxu3 %v3729_v36  ;;  %v3705_v26 = vor.u32 %v4312_v60, %v3704_v9  ;;  %v3114_v36 = vld [vmem:[#allocation2 + $0xf8] sm:$0xf0]  ;;  %v3053_v25 = vor.u32 %v4147_v56, %v3050_v22  ;;  %v3170_v6 = vld [vmem:[#allocation2 + $0x168] sm:$0xf0]  ;;  %v4193_v9 = vld [vmem:[#allocation2 + $0x1e4] sm:$0xf] }
 0x109   :  { %1687 = vmatmul.bf16.vlgmr.msrb.gmra.mxu0 %v4847_v43  ;;  %1715 = vmatmul.bf16.vlgmr.msrb.gmra.mxu2 %v4855_v55  ;;  %v3234_v60 = vld [vmem:[#allocation2 + $0x1e8] sm:$0xf0]  ;;  %v4159_v20 = vld [vmem:[#allocation2 + $0xd4] sm:$0xf]  ;;  %v3098_v22 = vld [vmem:[#allocation2 + $0xd8] sm:$0xf0] }
 0x10a   :  { %1701 = vmatmul.bf16.vlgmr.msra.gmra.mxu1 %v4851_v51  ;;  %1739 = vmatpush.bf16.msra.mxu0 %v3529_v42  ;;  %v435_v42 = vrot.slane %v4788_v24, 1  ;;  %v3117_v24 = vor.u32 %v4163_v23, %v3114_v36  ;;  %v3237_v56 = vor.u32 %v4193_v9, %v3234_v60  ;;  %v4175_v23 = vld [vmem:[#allocation2 + $0x154] sm:$0xf]  ;;  %v3226_v36 = vld [vmem:[#allocation2 + $0x1d8] sm:$0xf0]  ;;  %v3101_v27 = vor.u32 %v4159_v20, %v3098_v22  ;;  %v4398_v46 = vld [vmem:[%s5179_s13 + $0x8] sm:$0xff] }
 0x10b   :  { %1729 = vmatmul.bf16.vlgmr.msra.gmra.mxu3 %v4861_v59  ;;  %1753 = vmatpush.bf16.msrb.mxu1 %v3593_v28  ;;  %v432_v28 = vrot.slane %v4778_v16, 1  ;;  %v439_v16 = vsel %vm438_vm5, %v430_v38, %v434_v39  ;;  %v4141_v38 = vld [vmem:[#allocation2 + $0x44] sm:$0xf]  ;;  %v3026_v39 = vld [vmem:[#allocation2 + $0x48] sm:$0xf0] }
 0x10c   :  { %1767 = vmatpush.bf16.msra.mxu2 %v3657_v53  ;;  %1781 = vmatpush.bf16.msrb.mxu3 %v3721_v10  ;;  %v3569_v53 = vor.u32 %v4278_v2, %v3568_v14  ;;  %v3633_v10 = vor.u32 %v4294_v7, %v3632_v12  ;;  %v440_v62 = vsel %vm438_vm5, %v431_v40, %v435_v42  ;;  %v4143_v7 = vld [vmem:[#allocation2 + $0x54] sm:$0xf]  ;;  %v3202_v9 = vld [vmem:[#allocation2 + $0x1a8] sm:$0xf0] }
 0x10d   :  { %v444_v17 = vsel %vm438_vm5, %v435_v42, %v431_v40  ;;  %v441_v1 = vsel %vm438_vm5, %v432_v28, %v436_v52  ;;  %v4897_v11 = vpack.c.bf16 %v443_v29, %v439_v16  ;;  %v3045_v14 = vor.u32 %v4145_v34, %v3042_v18  ;;  %v4157_v40 = vld [vmem:[#allocation2 + $0xc4] sm:$0xf]  ;;  %v4171_v16 = vld [vmem:[#allocation2 + $0x134] sm:$0xf]  ;;  %v3146_v29 = vld [vmem:[#allocation2 + $0x138] sm:$0xf0] }
 0x10e   :  { %1740 = vmatpush.bf16.msra.mxu0 %v3521_v63  ;;  %v4161_v63 = vld [vmem:[#allocation2 + $0xe4] sm:$0xf]  ;;  %v4899_v13 = vpack.c.bf16 %v444_v17, %v440_v62  ;;  %v3173_v12 = vor.u32 %v4177_v48, %v3170_v6  ;;  %v4187_v62 = vld [vmem:[#allocation2 + $0x1b4] sm:$0xf]  ;;  %v3210_v17 = vld [vmem:[#allocation2 + $0x1b8] sm:$0xf0] }
 0x10f   :  { %1754 = vmatpush.bf16.msrb.mxu1 %v3585_v3  ;;  %v445_v3 = vsel %vm438_vm5, %v436_v52, %v432_v28  ;;  %v3109_v2 = vor.u32 %v4161_v63, %v3106_v4  ;;  %v3090_v28 = vld [vmem:[#allocation2 + $0xc8] sm:$0xf0]  ;;  %v4173_v52 = vld [vmem:[#allocation2 + $0x144] sm:$0xf]  ;;  %v3149_v63 = vor.u32 %v4171_v16, %v3146_v29  ;;  %v3213_v4 = vor.u32 %v4187_v62, %v3210_v17  ;;  %v4167_v22 = vld [vmem:[#allocation2 + $0x114] sm:$0xf] }
 0x110   :  { %1768 = vmatpush.bf16.msra.mxu2 %v3649_v35  ;;  %1782 = vmatpush.bf16.msrb.mxu3 %v3713_v8  ;;  %v442_v8 = vsel %vm438_vm5, %v433_v33, %v437_v32  ;;  %v3093_v31 = vor.u32 %v4157_v40, %v3090_v28  ;;  %v4139_v33 = vld [vmem:[#allocation2 + $0x34] sm:$0xf]  ;;  %v3018_v32 = vld [vmem:[#allocation2 + $0x38] sm:$0xf0]  ;;  %v3074_v48 = vld [vmem:[#allocation2 + $0xa8] sm:$0xf0] }
 0x111   :  { %v4906_v21 = vpack.c.bf16 %v446_v30, %v442_v8  ;;  %v3021_v34 = vor.u32 %v4139_v33, %v3018_v32  ;;  %v4169_v6 = vld [vmem:[#allocation2 + $0x124] sm:$0xf]  ;;  %v3138_v8 = vld [vmem:[#allocation2 + $0x128] sm:$0xf0]  ;;  %v3370_v33 = vld [vmem:[#allocation2 + $0x2f8] sm:$0xf0] }
 0x112   :  { %1741 = vmatpush.bf16.msra.mxu0 %v3513_v15  ;;  %v4901_v15 = vpack.c.bf16 %v445_v3, %v441_v1  ;;  %v3010_v1 = vld [vmem:[#allocation2 + $0x28] sm:$0xf0]  ;;  %v4153_v3 = vld [vmem:[#allocation2 + $0xa4] sm:$0xf]  ;;  %v4243_v32 = vld [vmem:[#allocation2 + $0x374] sm:$0xf] }
 0x113   :  { %1755 = vmatpush.bf16.msrb.mxu1 %v3577_v19  ;;  %v3034_v19 = vld [vmem:[#allocation2 + $0x58] sm:$0xf0]  ;;  %v4185_v30 = vld [vmem:[#allocation2 + $0x1a4] sm:$0xf]  ;;  %v3058_v40 = vld [vmem:[#allocation2 + $0x88] sm:$0xf0] }
 0x114   :  { %1769 = vmatpush.bf16.msra.mxu2 %v3641_v45  ;;  %1783 = vmatpush.bf16.msrb.mxu3 %v3705_v26  ;;  %v3162_v45 = vld [vmem:[#allocation2 + $0x158] sm:$0xf0]  ;;  %v4191_v26 = vld [vmem:[#allocation2 + $0x1d4] sm:$0xf]  ;;  %v3037_v49 = vor.u32 %v4143_v7, %v3034_v19  ;;  %v3205_v20 = vor.u32 %v4185_v30, %v3202_v9  ;;  %v3490_v30 = vld [vmem:[#allocation2 + $0x3e8] sm:$0xf0] }
 0x115   :  { %v3165_v37 = vor.u32 %v4175_v23, %v3162_v45  ;;  %v3229_v42 = vor.u32 %v4191_v26, %v3226_v36  ;;  %v3002_v7 = vld [vmem:[#allocation2 + $0x18] sm:$0xf0]  ;;  %v4151_v19 = vld [vmem:[#allocation2 + $0x94] sm:$0xf] }
 0x116   :  { %1742 = vmatpush.bf16.msra.mxu0 %v3505_v54  ;;  %v3154_v54 = vld [vmem:[#allocation2 + $0x148] sm:$0xf0]  ;;  %v3130_v23 = vld [vmem:[#allocation2 + $0x118] sm:$0xf0]  ;;  %v4183_v45 = vld [vmem:[#allocation2 + $0x194] sm:$0xf] }
 0x117   :  { %1756 = vmatpush.bf16.msrb.mxu1 %v3569_v53  ;;  %v4189_v53 = vld [vmem:[#allocation2 + $0x1c4] sm:$0xf]  ;;  %v3157_v58 = vor.u32 %v4173_v52, %v3154_v54  ;;  %v3194_v26 = vld [vmem:[#allocation2 + $0x198] sm:$0xf0]  ;;  %v3122_v52 = vld [vmem:[#allocation2 + $0x108] sm:$0xf0] }
 0x118   :  { %1770 = vmatpush.bf16.msra.mxu2 %v3633_v10  ;;  %1784 = vmatpush.bf16.msrb.mxu3 %v3697_v5  ;;  %v3218_v10 = vld [vmem:[#allocation2 + $0x1c8] sm:$0xf0]  ;;  %v4155_v5 = vld [vmem:[#allocation2 + $0xb4] sm:$0xf]  ;;  %v3197_v28 = vor.u32 %v4183_v45, %v3194_v26  ;;  %v4181_v54 = vld [vmem:[#allocation2 + $0x184] sm:$0xf] }
 0x119   :  { %3772 = vmatmul.msk.bf16.vlgmr.msra.gmra.mxu0 %vm4889_vm7, %v4897_v11  ;;  %v4259_v16 = vld [vmem:[#allocation2 + $0x3f4] sm:$0xf]  ;;  %v3498_v29 = vld [vmem:[#allocation2 + $0x3f8] sm:$0xf0] }
 0x11a   :  { %1791 = vmatpush.bf16.msrb.mxu0 %v3053_v25  ;;  %3775 = vmatmul.msk.bf16.vlgmr.msrb.gmra.mxu1 %vm4889_vm7, %v4899_v13  ;;  %v3029_v25 = vor.u32 %v4141_v38, %v3026_v39  ;;  %v3133_v38 = vor.u32 %v4167_v22, %v3130_v23  ;;  %v4149_v39 = vld [vmem:[#allocation2 + $0x84] sm:$0xf]  ;;  %v3418_v22 = vld [vmem:[#allocation2 + $0x358] sm:$0xf0]  ;;  %v4255_v23 = vld [vmem:[#allocation2 + $0x3d4] sm:$0xf] }
 0x11b   :  { %1805 = vmatpush.bf16.msra.mxu1 %v3117_v24  ;;  %3778 = vmatmul.msk.bf16.vlgmr.msra.gmra.mxu2 %vm4889_vm7, %v4901_v15  ;;  %v3221_v24 = vor.u32 %v4189_v53, %v3218_v10  ;;  %v3186_v53 = vld [vmem:[#allocation2 + $0x188] sm:$0xf0]  ;;  %v4211_v10 = vld [vmem:[#allocation2 + $0x274] sm:$0xf]  ;;  %v3482_v45 = vld [vmem:[#allocation2 + $0x3d8] sm:$0xf0] }
 0x11c   :  { %1819 = vmatpush.bf16.msrb.mxu2 %v3181_v61  ;;  %1833 = vmatpush.bf16.msra.mxu3 %v3245_v0  ;;  %v3082_v61 = vld [vmem:[#allocation2 + $0xb8] sm:$0xf0]  ;;  %v4137_v0 = vld [vmem:[#allocation2 + $0x24] sm:$0xf]  ;;  %v3189_v62 = vor.u32 %v4181_v54, %v3186_v53  ;;  %v4203_v54 = vld [vmem:[#allocation2 + $0x234] sm:$0xf] }
 0x11d   :  { %3781 = vmatmul.msk.bf16.vlgmr.msrb.gmra.mxu3 %vm4889_vm7, %v4906_v21  ;;  %v3085_v18 = vor.u32 %v4155_v5, %v3082_v61  ;;  %v3013_v60 = vor.u32 %v4137_v0, %v3010_v1  ;;  %v3434_v5 = vld [vmem:[#allocation2 + $0x378] sm:$0xf0]  ;;  %v3298_v0 = vld [vmem:[#allocation2 + $0x268] sm:$0xf0]  ;;  %v4225_v1 = vld [vmem:[#allocation2 + $0x2e4] sm:$0xf] }
 0x11e   :  { %1792 = vmatpush.bf16.msrb.mxu0 %v3045_v14  ;;  %v3077_v14 = vor.u32 %v4153_v3, %v3074_v48  ;;  %v3501_v3 = vor.u32 %v4259_v16, %v3498_v29  ;;  %v4241_v48 = vld [vmem:[#allocation2 + $0x364] sm:$0xf]  ;;  %v3274_v53 = vld [vmem:[#allocation2 + $0x238] sm:$0xf0] }
 0x11f   :  { %1806 = vmatpush.bf16.msra.mxu1 %v3109_v2  ;;  %v3141_v2 = vor.u32 %v4169_v6, %v3138_v8  ;;  %v3426_v6 = vld [vmem:[#allocation2 + $0x368] sm:$0xf0]  ;;  %v4257_v8 = vld [vmem:[#allocation2 + $0x3e4] sm:$0xf] }
 0x120   :  { %1820 = vmatpush.bf16.msrb.mxu2 %v3173_v12  ;;  %1834 = vmatpush.bf16.msra.mxu3 %v3237_v56  ;;  %v4135_v12 = vld [vmem:[#allocation2 + $0x14] sm:$0xf]  ;;  %v3066_v56 = vld [vmem:[#allocation2 + $0x98] sm:$0xf0]  ;;  %v4201_v29 = vld [vmem:[#allocation2 + $0x224] sm:$0xf] }
 0x121   :  { %v3005_v36 = vor.u32 %v4135_v12, %v3002_v7  ;;  %v3290_v12 = vld [vmem:[#allocation2 + $0x258] sm:$0xf0]  ;;  %v4223_v7 = vld [vmem:[#allocation2 + $0x2d4] sm:$0xf] }
 0x122   :  { %1793 = vmatpush.bf16.msrb.mxu0 %v3037_v49  ;;  %v4133_v49 = vld [vmem:[#allocation2 + $0x4] sm:$0xf] }
 0x123   :  { %1807 = vmatpush.bf16.msra.mxu1 %v3101_v27  ;;  %v2994_v27 = vld [vmem:[#allocation2 + $0x8] sm:$0xf0] }
 0x124   :  { %1821 = vmatpush.bf16.msrb.mxu2 %v3165_v37  ;;  %1835 = vmatpush.bf16.msra.mxu3 %v3229_v42  ;;  %v3069_v37 = vor.u32 %v4151_v19, %v3066_v56  ;;  %v4165_v42 = vld [vmem:[#allocation2 + $0x104] sm:$0xf]  ;;  %v3493_v19 = vor.u32 %v4257_v8, %v3490_v30  ;;  %v4239_v56 = vld [vmem:[#allocation2 + $0x354] sm:$0xf]  ;;  %v3258_v30 = vld [vmem:[#allocation2 + $0x218] sm:$0xf0] }
 0x125   :  { %v3125_v61 = vor.u32 %v4165_v42, %v3122_v52  ;;  %v3474_v42 = vld [vmem:[#allocation2 + $0x3c8] sm:$0xf0]  ;;  %v4199_v8 = vld [vmem:[#allocation2 + $0x214] sm:$0xf] }
 0x126   :  { %1794 = vmatpush.bf16.msrb.mxu0 %v3029_v25  ;;  %v3306_v25 = vld [vmem:[#allocation2 + $0x278] sm:$0xf0] }
 0x127   :  { %1808 = vmatpush.bf16.msra.mxu1 %v3093_v31  ;;  %v4227_v31 = vld [vmem:[#allocation2 + $0x2f4] sm:$0xf]  ;;  %v3309_v17 = vor.u32 %v4211_v10, %v3306_v25 }
 0x128   :  { %1822 = vmatpush.bf16.msrb.mxu2 %v3157_v58  ;;  %1836 = vmatpush.bf16.msra.mxu3 %v3221_v24  ;;  %v2997_v58 = vor.u32 %v4133_v49, %v2994_v27  ;;  %v3061_v24 = vor.u32 %v4149_v39, %v3058_v40  ;;  %v4205_v49 = vld [vmem:[#allocation2 + $0x244] sm:$0xf]  ;;  %v3282_v27 = vld [vmem:[#allocation2 + $0x248] sm:$0xf0]  ;;  %v4219_v10 = vld [vmem:[#allocation2 + $0x2b4] sm:$0xf] }
 0x129   :  { %v4237_v39 = vld [vmem:[#allocation2 + $0x344] sm:$0xf] }
 0x12a   :  { %1795 = vmatpush.bf16.msrb.mxu0 %v3021_v34  ;;  %v3373_v34 = vor.u32 %v4227_v31, %v3370_v33  ;;  %v4253_v40 = vld [vmem:[#allocation2 + $0x3c4] sm:$0xf]  ;;  %v3338_v31 = vld [vmem:[#allocation2 + $0x2b8] sm:$0xf0] }
 0x12b   :  { %1809 = vmatpush.bf16.msra.mxu1 %v3085_v18  ;;  %v3437_v18 = vor.u32 %v4243_v32, %v3434_v5  ;;  %v3477_v25 = vor.u32 %v4253_v40, %v3474_v42  ;;  %v3402_v33 = vld [vmem:[#allocation2 + $0x338] sm:$0xf0]  ;;  %v4251_v32 = vld [vmem:[#allocation2 + $0x3b4] sm:$0xf] }
 0x12c   :  { %1823 = vmatpush.bf16.msrb.mxu2 %v3149_v63  ;;  %1837 = vmatpush.bf16.msra.mxu3 %v3213_v4  ;;  %v4209_v63 = vld [vmem:[#allocation2 + $0x264] sm:$0xf]  ;;  %v3362_v4 = vld [vmem:[#allocation2 + $0x2e8] sm:$0xf0]  ;;  %v3466_v5 = vld [vmem:[#allocation2 + $0x3b8] sm:$0xf0] }
 0x12d   :  { %v3301_v9 = vor.u32 %v4209_v63, %v3298_v0  ;;  %v4233_v63 = vld [vmem:[#allocation2 + $0x324] sm:$0xf]  ;;  %v3394_v0 = vld [vmem:[#allocation2 + $0x328] sm:$0xf0]  ;;  %v3626_v42 = vld [vmem:[#allocation2 + $0x4f8] sm:$0xf0] }
 0x12e   :  { %1796 = vmatpush.bf16.msrb.mxu0 %v3013_v60  ;;  %v3365_v60 = vor.u32 %v4225_v1, %v3362_v4  ;;  %v4249_v1 = vld [vmem:[#allocation2 + $0x3a4] sm:$0xf] }
 0x12f   :  { %1810 = vmatpush.bf16.msra.mxu1 %v3077_v14  ;;  %v3429_v14 = vor.u32 %v4241_v48, %v3426_v6  ;;  %v3397_v6 = vor.u32 %v4233_v63, %v3394_v0 }
 0x130   :  { %1824 = vmatpush.bf16.msrb.mxu2 %v3141_v2  ;;  %1838 = vmatpush.bf16.msra.mxu3 %v3205_v20  ;;  %v4207_v2 = vld [vmem:[#allocation2 + $0x254] sm:$0xf]  ;;  %v3354_v20 = vld [vmem:[#allocation2 + $0x2d8] sm:$0xf0] }
 0x131   :  { %v3357_v26 = vor.u32 %v4223_v7, %v3354_v20  ;;  %v4247_v7 = vld [vmem:[#allocation2 + $0x394] sm:$0xf]  ;;  %v3261_v20 = vor.u32 %v4199_v8, %v3258_v30  ;;  %v3674_v30 = vld [vmem:[#allocation2 + $0x558] sm:$0xf0] }
 0x132   :  { %1797 = vmatpush.bf16.msrb.mxu0 %v3005_v36  ;;  %v3421_v36 = vor.u32 %v4239_v56, %v3418_v22  ;;  %v4197_v56 = vld [vmem:[#allocation2 + $0x204] sm:$0xf]  ;;  %v3250_v22 = vld [vmem:[#allocation2 + $0x208] sm:$0xf0]  ;;  %v4303_v8 = vld [vmem:[#allocation2 + $0x554] sm:$0xf] }
 0x133   :  { %1811 = vmatpush.bf16.msra.mxu1 %v3069_v37  ;;  %v4221_v37 = vld [vmem:[#allocation2 + $0x2c4] sm:$0xf]  ;;  %v3253_v40 = vor.u32 %v4197_v56, %v3250_v22  ;;  %v3602_v56 = vld [vmem:[#allocation2 + $0x4c8] sm:$0xf0] }
 0x134   :  { %1825 = vmatpush.bf16.msrb.mxu2 %v3133_v38  ;;  %1839 = vmatpush.bf16.msra.mxu3 %v3197_v28  ;;  %v3346_v38 = vld [vmem:[#allocation2 + $0x2c8] sm:$0xf0]  ;;  %v3285_v28 = vor.u32 %v4205_v49, %v3282_v27  ;;  %v4301_v22 = vld [vmem:[#allocation2 + $0x544] sm:$0xf] }
 0x135   :  { %v3378_v27 = vld [vmem:[#allocation2 + $0x308] sm:$0xf0] }
 0x136   :  { %1798 = vmatpush.bf16.msrb.mxu0 %v2997_v58  ;;  %v4235_v58 = vld [vmem:[#allocation2 + $0x334] sm:$0xf] }
 0x137   :  { %1812 = vmatpush.bf16.msra.mxu1 %v3061_v24  ;;  %v3277_v24 = vor.u32 %v4203_v54, %v3274_v53  ;;  %v3405_v16 = vor.u32 %v4235_v58, %v3402_v33  ;;  %v4323_v53 = vld [vmem:[#allocation2 + $0x5f4] sm:$0xf] }
 0x138   :  { %1826 = vmatpush.bf16.msrb.mxu2 %v3125_v61  ;;  %1840 = vmatpush.bf16.msra.mxu3 %v3189_v62  ;;  %v3341_v61 = vor.u32 %v4219_v10, %v3338_v31  ;;  %v3266_v62 = vld [vmem:[#allocation2 + $0x228] sm:$0xf0]  ;;  %v3754_v10 = vld [vmem:[#allocation2 + $0x5f8] sm:$0xf0] }
 0x139   :  { %3784 = vmatmul.msk.bf16.vlgmr.msrb.gmra.mxu0 %vm4813_vm4, %v4821_v44  ;;  %v3293_v44 = vor.u32 %v4207_v2, %v3290_v12  ;;  %v3269_v4 = vor.u32 %v4201_v29, %v3266_v62  ;;  %v4231_v2 = vld [vmem:[#allocation2 + $0x314] sm:$0xf]  ;;  %v3386_v12 = vld [vmem:[#allocation2 + $0x318] sm:$0xf0]  ;;  %v4305_v29 = vld [vmem:[#allocation2 + $0x564] sm:$0xf] }
 0x13a   :  { %1847 = vmatpush.bf16.msra.mxu0 %v3309_v17  ;;  %3787 = vmatmul.msk.bf16.vlgmr.msra.gmra.mxu1 %vm4813_vm4, %v4823_v47  ;;  %v3485_v47 = vor.u32 %v4255_v23, %v3482_v45  ;;  %v4217_v17 = vld [vmem:[#allocation2 + $0x2a4] sm:$0xf]  ;;  %v3389_v45 = vor.u32 %v4231_v2, %v3386_v12  ;;  %v3682_v62 = vld [vmem:[#allocation2 + $0x568] sm:$0xf0]  ;;  %v3677_v12 = vor.u32 %v4303_v8, %v3674_v30 }
 0x13b   :  { %1861 = vmatpush.bf16.msrb.mxu1 %v3373_v34  ;;  %3790 = vmatmul.msk.bf16.vlgmr.msrb.gmra.mxu2 %vm4813_vm4, %v4825_v50  ;;  %v3410_v50 = vld [vmem:[#allocation2 + $0x348] sm:$0xf0]  ;;  %v3469_v34 = vor.u32 %v4251_v32, %v3466_v5  ;;  %v4273_v32 = vld [vmem:[#allocation2 + $0x464] sm:$0xf]  ;;  %v3685_v0 = vor.u32 %v4305_v29, %v3682_v62  ;;  %v4279_v29 = vld [vmem:[#allocation2 + $0x494] sm:$0xf] }
 0x13c   :  { %1875 = vmatpush.bf16.msra.mxu2 %v3437_v18  ;;  %1889 = vmatpush.bf16.msrb.mxu3 %v3501_v3  ;;  %v3413_v52 = vor.u32 %v4237_v39, %v3410_v50  ;;  %v3330_v18 = vld [vmem:[#allocation2 + $0x2a8] sm:$0xf0]  ;;  %v3562_v39 = vld [vmem:[#allocation2 + $0x478] sm:$0xf0]  ;;  %v4291_v50 = vld [vmem:[#allocation2 + $0x4f4] sm:$0xf] }
 0x13d   :  { %3793 = vmatmul.msk.bf16.vlgmr.msra.gmra.mxu3 %vm4813_vm4, %v4837_v57  ;;  %v3349_v57 = vor.u32 %v4221_v37, %v3346_v38  ;;  %v3458_v3 = vld [vmem:[#allocation2 + $0x3a8] sm:$0xf0]  ;;  %v3333_v48 = vor.u32 %v4217_v17, %v3330_v18  ;;  %v4245_v37 = vld [vmem:[#allocation2 + $0x384] sm:$0xf]  ;;  %v4275_v38 = vld [vmem:[#allocation2 + $0x474] sm:$0xf]  ;;  %v3629_v58 = vor.u32 %v4291_v50, %v3626_v42 }
 0x13e   :  { %1848 = vmatpush.bf16.msra.mxu0 %v3301_v9  ;;  %v4215_v9 = vld [vmem:[#allocation2 + $0x294] sm:$0xf]  ;;  %v3565_v31 = vor.u32 %v4275_v38, %v3562_v39  ;;  %v3554_v5 = vld [vmem:[#allocation2 + $0x468] sm:$0xf0]  ;;  %v4321_v17 = vld [vmem:[#allocation2 + $0x5e4] sm:$0xf] }
 0x13f   :  { %1862 = vmatpush.bf16.msrb.mxu1 %v3365_v60  ;;  %v3461_v60 = vor.u32 %v4249_v1, %v3458_v3  ;;  %v3557_v18 = vor.u32 %v4273_v32, %v3554_v5  ;;  %v4271_v1 = vld [vmem:[#allocation2 + $0x454] sm:$0xf]  ;;  %v3546_v3 = vld [vmem:[#allocation2 + $0x458] sm:$0xf0]  ;;  %v4277_v8 = vld [vmem:[#allocation2 + $0x484] sm:$0xf] }
 0x140   :  { %1876 = vmatpush.bf16.msra.mxu2 %v3429_v14  ;;  %1890 = vmatpush.bf16.msrb.mxu3 %v3493_v19  ;;  %v3322_v14 = vld [vmem:[#allocation2 + $0x298] sm:$0xf0]  ;;  %v4315_v39 = vld [vmem:[#allocation2 + $0x5b4] sm:$0xf] }
 0x141   :  { %v3450_v19 = vld [vmem:[#allocation2 + $0x398] sm:$0xf0]  ;;  %v3325_v23 = vor.u32 %v4215_v9, %v3322_v14  ;;  %v4319_v9 = vld [vmem:[#allocation2 + $0x5d4] sm:$0xf]  ;;  %v3549_v14 = vor.u32 %v4271_v1, %v3546_v3 }
 0x142   :  { %1849 = vmatpush.bf16.msra.mxu0 %v3293_v44  ;;  %v4213_v44 = vld [vmem:[#allocation2 + $0x284] sm:$0xf]  ;;  %v3453_v49 = vor.u32 %v4247_v7, %v3450_v19  ;;  %v3658_v38 = vld [vmem:[#allocation2 + $0x538] sm:$0xf0] }
 0x143   :  { %1863 = vmatpush.bf16.msrb.mxu1 %v3357_v26  ;;  %v3314_v26 = vld [vmem:[#allocation2 + $0x288] sm:$0xf0]  ;;  %v4269_v7 = vld [vmem:[#allocation2 + $0x444] sm:$0xf]  ;;  %v3722_v50 = vld [vmem:[#allocation2 + $0x5b8] sm:$0xf0] }
 0x144   :  { %1877 = vmatpush.bf16.msra.mxu2 %v3421_v36  ;;  %1891 = vmatpush.bf16.msrb.mxu3 %v3485_v47  ;;  %v4229_v36 = vld [vmem:[#allocation2 + $0x304] sm:$0xf]  ;;  %v3442_v47 = vld [vmem:[#allocation2 + $0x388] sm:$0xf0] }
 0x145   :  { %v3381_v54 = vor.u32 %v4229_v36, %v3378_v27  ;;  %v4285_v19 = vld [vmem:[#allocation2 + $0x4c4] sm:$0xf]  ;;  %v3530_v36 = vld [vmem:[#allocation2 + $0x438] sm:$0xf0] }
 0x146   :  { %1850 = vmatpush.bf16.msra.mxu0 %v3285_v28  ;;  %v4307_v28 = vld [vmem:[#allocation2 + $0x574] sm:$0xf] }
 0x147   :  { %1864 = vmatpush.bf16.msrb.mxu1 %v3349_v57  ;;  %v3690_v57 = vld [vmem:[#allocation2 + $0x578] sm:$0xf0] }
 0x148   :  { %1878 = vmatpush.bf16.msra.mxu2 %v3413_v52  ;;  %1892 = vmatpush.bf16.msrb.mxu3 %v3477_v25  ;;  %v3317_v52 = vor.u32 %v4213_v44, %v3314_v26  ;;  %v3445_v25 = vor.u32 %v4245_v37, %v3442_v47  ;;  %v3693_v33 = vor.u32 %v4307_v28, %v3690_v57  ;;  %v4267_v26 = vld [vmem:[#allocation2 + $0x434] sm:$0xf]  ;;  %v3594_v37 = vld [vmem:[#allocation2 + $0x4b8] sm:$0xf0]  ;;  %v4265_v57 = vld [vmem:[#allocation2 + $0x424] sm:$0xf] }
 0x149   :  { %v4299_v47 = vld [vmem:[#allocation2 + $0x534] sm:$0xf] }
 0x14a   :  { %1851 = vmatpush.bf16.msra.mxu0 %v3277_v24  ;;  %v4289_v24 = vld [vmem:[#allocation2 + $0x4e4] sm:$0xf]  ;;  %v3661_v28 = vor.u32 %v4299_v47, %v3658_v38 }
 0x14b   :  { %1865 = vmatpush.bf16.msrb.mxu1 %v3341_v61  ;;  %v3757_v61 = vor.u32 %v4323_v53, %v3754_v10  ;;  %v3725_v53 = vor.u32 %v4315_v39, %v3722_v50  ;;  %v3586_v10 = vld [vmem:[#allocation2 + $0x4a8] sm:$0xf0] }
 0x14c   :  { %1879 = vmatpush.bf16.msra.mxu2 %v3405_v16  ;;  %1893 = vmatpush.bf16.msrb.mxu3 %v3469_v34  ;;  %v3618_v16 = vld [vmem:[#allocation2 + $0x4e8] sm:$0xf0] }
 0x14d   :  { %v3746_v34 = vld [vmem:[#allocation2 + $0x5e8] sm:$0xf0]  ;;  %v3621_v63 = vor.u32 %v4289_v24, %v3618_v16  ;;  %v3514_v16 = vld [vmem:[#allocation2 + $0x418] sm:$0xf0] }
 0x14e   :  { %1852 = vmatpush.bf16.msra.mxu0 %v3269_v4  ;;  %v4287_v4 = vld [vmem:[#allocation2 + $0x4d4] sm:$0xf] }
 0x14f   :  { %1866 = vmatpush.bf16.msrb.mxu1 %v3333_v48  ;;  %v3749_v48 = vor.u32 %v4321_v17, %v3746_v34  ;;  %v3578_v17 = vld [vmem:[#allocation2 + $0x498] sm:$0xf0]  ;;  %v4295_v34 = vld [vmem:[#allocation2 + $0x514] sm:$0xf] }
 0x150   :  { %1880 = vmatpush.bf16.msra.mxu2 %v3397_v6  ;;  %1894 = vmatpush.bf16.msrb.mxu3 %v3461_v60  ;;  %v3610_v6 = vld [vmem:[#allocation2 + $0x4d8] sm:$0xf0]  ;;  %v3581_v3 = vor.u32 %v4279_v29, %v3578_v17 }
 0x151   :  { %v3738_v60 = vld [vmem:[#allocation2 + $0x5d8] sm:$0xf0]  ;;  %v3613_v2 = vor.u32 %v4287_v4, %v3610_v6  ;;  %v3506_v6 = vld [vmem:[#allocation2 + $0x408] sm:$0xf0] }
 0x152   :  { %1853 = vmatpush.bf16.msra.mxu0 %v3261_v20  ;;  %v3741_v20 = vor.u32 %v4319_v9, %v3738_v60  ;;  %v3570_v9 = vld [vmem:[#allocation2 + $0x488] sm:$0xf0]  ;;  %v4293_v60 = vld [vmem:[#allocation2 + $0x504] sm:$0xf] }
 0x153   :  { %1867 = vmatpush.bf16.msrb.mxu1 %v3325_v23  ;;  %v4317_v23 = vld [vmem:[#allocation2 + $0x5c4] sm:$0xf] }
 0x154   :  { %1881 = vmatpush.bf16.msra.mxu2 %v3389_v45  ;;  %1895 = vmatpush.bf16.msrb.mxu3 %v3453_v49  ;;  %v4283_v49 = vld [vmem:[#allocation2 + $0x4b4] sm:$0xf] }
 0x155   :  { %v3597_v42 = vor.u32 %v4283_v49, %v3594_v37 }
 0x156   :  { %1854 = vmatpush.bf16.msra.mxu0 %v3253_v40  ;;  %v3533_v40 = vor.u32 %v4267_v26, %v3530_v36 }
 0x157   :  { %1868 = vmatpush.bf16.msrb.mxu1 %v3317_v52  ;;  %v3522_v52 = vld [vmem:[#allocation2 + $0x428] sm:$0xf0] }
 0x158   :  { %1882 = vmatpush.bf16.msra.mxu2 %v3381_v54  ;;  %1896 = vmatpush.bf16.msrb.mxu3 %v3445_v25  ;;  %v4281_v54 = vld [vmem:[#allocation2 + $0x4a4] sm:$0xf]  ;;  %v3525_v32 = vor.u32 %v4265_v57, %v3522_v52 }
 0x159   :  { %1855 = vmatmul.bf16.vlgmr.msra.gmra.mxu0 %v4847_v43  ;;  %v3538_v43 = vld [vmem:[#allocation2 + $0x448] sm:$0xf0]  ;;  %v4297_v25 = vld [vmem:[#allocation2 + $0x524] sm:$0xf]  ;;  %v3589_v5 = vor.u32 %v4281_v54, %v3586_v10 }
 0x15a   :  { %1903 = vmatpush.bf16.msrb.mxu0 %v3565_v31  ;;  %1869 = vmatmul.bf16.vlgmr.msrb.gmra.mxu1 %v4851_v51  ;;  %v3666_v51 = vld [vmem:[#allocation2 + $0x548] sm:$0xf0]  ;;  %v3541_v45 = vor.u32 %v4269_v7, %v3538_v43  ;;  %v3573_v43 = vor.u32 %v4277_v8, %v3570_v9 }
 0x15b   :  { %1917 = vmatpush.bf16.msra.mxu1 %v3629_v58  ;;  %1883 = vmatmul.bf16.vlgmr.msra.gmra.mxu2 %v4855_v55  ;;  %v3730_v55 = vld [vmem:[#allocation2 + $0x5c8] sm:$0xf0]  ;;  %v3669_v44 = vor.u32 %v4301_v22, %v3666_v51  ;;  %v4313_v58 = vld [vmem:[#allocation2 + $0x5a4] sm:$0xf] }
 0x15c   :  { %1931 = vmatpush.bf16.msrb.mxu2 %v3693_v33  ;;  %1945 = vmatpush.bf16.msra.mxu3 %v3757_v61  ;;  %v3733_v27 = vor.u32 %v4317_v23, %v3730_v55  ;;  %v3650_v31 = vld [vmem:[#allocation2 + $0x528] sm:$0xf0]  ;;  %v4263_v61 = vld [vmem:[#allocation2 + $0x414] sm:$0xf] }
 0x15d   :  { %1897 = vmatmul.bf16.vlgmr.msrb.gmra.mxu3 %v4861_v59  ;;  %v3605_v59 = vor.u32 %v4285_v19, %v3602_v56  ;;  %v3714_v33 = vld [vmem:[#allocation2 + $0x5a8] sm:$0xf0]  ;;  %v3653_v24 = vor.u32 %v4297_v25, %v3650_v31  ;;  %v3517_v1 = vor.u32 %v4263_v61, %v3514_v16 }
 0x15e   :  { %1904 = vmatpush.bf16.msrb.mxu0 %v3557_v18  ;;  %v3717_v62 = vor.u32 %v4313_v58, %v3714_v33  ;;  %v3642_v18 = vld [vmem:[#allocation2 + $0x518] sm:$0xf0] }
 0x15f   :  { %1918 = vmatpush.bf16.msra.mxu1 %v3621_v63  ;;  %v4311_v63 = vld [vmem:[#allocation2 + $0x594] sm:$0xf]  ;;  %v3645_v4 = vor.u32 %v4295_v34, %v3642_v18 }
 0x160   :  { %1932 = vmatpush.bf16.msrb.mxu2 %v3685_v0  ;;  %1946 = vmatpush.bf16.msra.mxu3 %v3749_v48  ;;  %v3706_v0 = vld [vmem:[#allocation2 + $0x598] sm:$0xf0]  ;;  %v4261_v48 = vld [vmem:[#allocation2 + $0x404] sm:$0xf] }
 0x161   :  { %v3709_v30 = vor.u32 %v4311_v63, %v3706_v0  ;;  %v3509_v7 = vor.u32 %v4261_v48, %v3506_v6 }
 0x162   :  { %1905 = vmatpush.bf16.msrb.mxu0 %v3549_v14  ;;  %v3634_v14 = vld [vmem:[#allocation2 + $0x508] sm:$0xf0] }
 0x163   :  { %1919 = vmatpush.bf16.msra.mxu1 %v3613_v2  ;;  %v4309_v2 = vld [vmem:[#allocation2 + $0x584] sm:$0xf]  ;;  %v3637_v19 = vor.u32 %v4293_v60, %v3634_v14 }
 0x164   :  { %1933 = vmatpush.bf16.msrb.mxu2 %v3677_v12  ;;  %1947 = vmatpush.bf16.msra.mxu3 %v3741_v20  ;;  %v3698_v12 = vld [vmem:[#allocation2 + $0x588] sm:$0xf0] }
 0x165   :  { %v3701_v20 = vor.u32 %v4309_v2, %v3698_v12 }
 0x166   :  { %1906 = vmatpush.bf16.msrb.mxu0 %v3541_v45 }
 0x167   :  { %1920 = vmatpush.bf16.msra.mxu1 %v3605_v59 }
 0x168   :  { %1934 = vmatpush.bf16.msrb.mxu2 %v3669_v44  ;;  %1948 = vmatpush.bf16.msra.mxu3 %v3733_v27 }
 0x16a   :  { %1907 = vmatpush.bf16.msrb.mxu0 %v3533_v40 }
 0x16b   :  { %1921 = vmatpush.bf16.msra.mxu1 %v3597_v42 }
 0x16c   :  { %1935 = vmatpush.bf16.msrb.mxu2 %v3661_v28  ;;  %1949 = vmatpush.bf16.msra.mxu3 %v3725_v53 }
 0x16e   :  { %1908 = vmatpush.bf16.msrb.mxu0 %v3525_v32 }
 0x16f   :  { %1922 = vmatpush.bf16.msra.mxu1 %v3589_v5 }
 0x170   :  { %1936 = vmatpush.bf16.msrb.mxu2 %v3653_v24  ;;  %1950 = vmatpush.bf16.msra.mxu3 %v3717_v62 }
 0x172   :  { %1909 = vmatpush.bf16.msrb.mxu0 %v3517_v1 }
 0x173   :  { %1923 = vmatpush.bf16.msra.mxu1 %v3581_v3 }
 0x174   :  { %1937 = vmatpush.bf16.msrb.mxu2 %v3645_v4  ;;  %1951 = vmatpush.bf16.msra.mxu3 %v3709_v30 }
 0x176   :  { %1910 = vmatpush.bf16.msrb.mxu0 %v3509_v7  ;;  %v1632_v56 = vpop.f32.mrf.mxu0 }
 0x177   :  { %1924 = vmatpush.bf16.msra.mxu1 %v3573_v43  ;;  %v1646_v22 = vpop.f32.mrf.mxu1 }
 0x178   :  { %1938 = vmatpush.bf16.msrb.mxu2 %v3637_v19  ;;  %1952 = vmatpush.bf16.msra.mxu3 %v3701_v20  ;;  %v1647_v51 = vadd.f32 %v1646_v22, %v1632_v56 }
 0x179   :  { %3796 = vmatmul.msk.bf16.vlgmr.msrb.gmra.mxu0 %vm4889_vm7, %v4897_v11 }
 0x17a   :  { %3799 = vmatmul.msk.bf16.vlgmr.msra.gmra.mxu1 %vm4889_vm7, %v4899_v13 }
 0x17b   :  { %3802 = vmatmul.msk.bf16.vlgmr.msrb.gmra.mxu2 %vm4889_vm7, %v4901_v15  ;;  %3805 = vmatmul.msk.bf16.vlgmr.msra.gmra.mxu3 %vm4889_vm7, %v4906_v21 }
 0x17c   :  { %v1660_v23 = vpop.f32.mrf.mxu2 }
 0x17d   :  { %v1661_v55 = vadd.f32 %v1660_v23, %v1647_v51 }
 0x17e   :  { %v1674_v45 = vpop.f32.mrf.mxu3  ;;  %v1634_v59 = vpop.f32.mrf.mxu0 }
 0x17f   :  { %v1648_v11 = vpop.f32.mrf.mxu1  ;;  %v1675_v44 = vadd.f32 %v1674_v45, %v1661_v55 }
 0x180   :  { %v1649_v26 = vadd.f32 %v1648_v11, %v1634_v59 }
 0x184   :  { %v1662_v36 = vpop.f32.mrf.mxu2 }
 0x185   :  { %v1663_v13 = vadd.f32 %v1662_v36, %v1649_v26 }
 0x186   :  { %v1676_v49 = vpop.f32.mrf.mxu3  ;;  %v1688_v27 = vpop.f32.mrf.mxu0 }
 0x187   :  { %v1689_v37 = vadd.f32 %v1688_v27, %v1675_v44  ;;  %v1702_v15 = vpop.f32.mrf.mxu1  ;;  %v1677_v47 = vadd.f32 %v1676_v49, %v1663_v13 }
 0x189   :  { %v1703_v38 = vadd.f32 %v1702_v15, %v1689_v37 }
 0x18c   :  { %v1716_v39 = vpop.f32.mrf.mxu2 }
 0x18d   :  { %v1717_v21 = vadd.f32 %v1716_v39, %v1703_v38 }
 0x18e   :  { %v1730_v50 = vpop.f32.mrf.mxu3  ;;  %v1690_v40 = vpop.f32.mrf.mxu0 }
 0x18f   :  { %v1731_v42 = vadd.f32 %v1730_v50, %v1717_v21  ;;  %v1704_v28 = vpop.f32.mrf.mxu1  ;;  %v1691_v57 = vadd.f32 %v1690_v40, %v1677_v47 }
 0x191   :  { %v1705_v10 = vadd.f32 %v1704_v28, %v1691_v57 }
 0x194   :  { %v1718_v52 = vpop.f32.mrf.mxu2 }
 0x195   :  { %v1719_v31 = vadd.f32 %v1718_v52, %v1705_v10 }
 0x196   :  { %v1732_v54 = vpop.f32.mrf.mxu3  ;;  %v1744_v53 = vpop.f32.mrf.mxu0 }
 0x197   :  { %v1758_v25 = vpop.f32.mrf.mxu1  ;;  %v1745_v58 = vadd.f32 %v1744_v53, %v1731_v42  ;;  %v1733_v32 = vadd.f32 %v1732_v54, %v1719_v31 }
 0x199   :  { %v1759_v61 = vadd.f32 %v1758_v25, %v1745_v58 }
 0x19e   :  { %v1772_v33 = vpop.f32.mrf.mxu2  ;;  %v1746_v24 = vpop.f32.mrf.mxu0 }
 0x19f   :  { %v1747_v16 = vadd.f32 %v1746_v24, %v1733_v32  ;;  %v1773_v29 = vadd.f32 %v1772_v33, %v1759_v61  ;;  %v1760_v62 = vpop.f32.mrf.mxu1 }
 0x1a0   :  { %v1786_v5 = vpop.f32.mrf.mxu3 }
 0x1a1   :  { %v1761_v17 = vadd.f32 %v1760_v62, %v1747_v16  ;;  %v4945_v18 = vadd.f32 %v1786_v5, %v1773_v29 }
 0x1a3   :  { %v1975_v3 = vmul.f32 %v4945_v18, %v4945_v18 }
 0x1a6   :  { %v1774_v34 = vpop.f32.mrf.mxu2 }
 0x1a7   :  { %v1775_v63 = vadd.f32 %v1774_v34, %v1761_v17 }
 0x1a8   :  { %v1788_v0 = vpop.f32.mrf.mxu3 }
 0x1a9   :  { %v4947_v1 = vadd.f32 %v1788_v0, %v1775_v63 }
 0x1ab   :  { %v1959_v4 = vadd.f32 %v4947_v1, %v4945_v18  ;;  %v1977_v48 = vmul.f32 %v4947_v1, %v4947_v1 }
 0x1ad   :  { %v1960_v6 = vrot.slane %v1959_v4, 4  ;;  %v1979_v8 = vadd.f32 %v1977_v48, %v1975_v3 }
 0x1af   :  { %v1961_v30 = vadd.f32 %v1960_v6, %v1959_v4  ;;  %v1980_v9 = vrot.slane %v1979_v8, 4  ;;  %v4332_v6 = vld [vmem:[#allocation4 + $0x38] sm:$0xff] }
 0x1b0   :  { %2473 = vmatpush.bf16.msra.mxu0 %v4332_v6  ;;  %v4351_v6 = vld [vmem:[#allocation4 + $0xd0] sm:$0xff] }
 0x1b1   :  { %v1962_v60 = vrot.slane %v1961_v30, 2  ;;  %v1981_v14 = vadd.f32 %v1980_v9, %v1979_v8  ;;  %v4340_v8 = vld [vmem:[#allocation4 + $0x78] sm:$0xff] }
 0x1b2   :  { %2487 = vmatpush.bf16.msrb.mxu1 %v4340_v8 }
 0x1b3   :  { %v1963_v2 = vadd.f32 %v1962_v60, %v1961_v30  ;;  %v1982_v12 = vrot.slane %v1981_v14, 2 }
 0x1b5   :  { %v1964_v7 = vrot.slane %v1963_v2, 1  ;;  %v1983_v43 = vadd.f32 %v1982_v12, %v1981_v14  ;;  %v4339_v12 = vld [vmem:[#allocation4 + $0x70] sm:$0xff] }
 0x1b6   :  { %v1800_v45 = vpop.f32.mrf.mxu0  ;;  %2488 = vmatpush.bf16.msrb.mxu1 %v4339_v12 }
 0x1b7   :  { %v1965_v19 = vadd.f32 %v1964_v7, %v1963_v2  ;;  %v1984_v20 = vrot.slane %v1983_v43, 1  ;;  %v1814_v59 = vpop.f32.mrf.mxu1  ;;  %v4331_v2 = vld [vmem:[#allocation4 + $0x30] sm:$0xff] }
 0x1b8   :  { %v1815_v15 = vadd.f32 %v1814_v59, %v1800_v45  ;;  %2474 = vmatpush.bf16.msra.mxu0 %v4331_v2  ;;  %v4330_v45 = vld [vmem:[#allocation4 + $0x28] sm:$0xff] }
 0x1b9   :  { %v4955_v56 = vmul.f32 0.0625, %v1965_v19  ;;  %v1985_v22 = vadd.f32 %v1984_v20, %v1983_v43  ;;  %v4338_v59 = vld [vmem:[#allocation4 + $0x68] sm:$0xff] }
 0x1ba   :  { %2489 = vmatpush.bf16.msrb.mxu1 %v4338_v59  ;;  %v4342_v2 = vld [vmem:[#allocation4 + $0x88] sm:$0xff]  ;;  %v4349_v59 = vld [vmem:[#allocation4 + $0xc0] sm:$0xff] }
 0x1bb   :  { %v4957_v51 = vmul.f32 0.0625, %v1985_v22  ;;  %v4961_v23 = vmul.f32 %v4955_v56, %v4955_v56 }
 0x1bc   :  { %2475 = vmatpush.bf16.msra.mxu0 %v4330_v45  ;;  %v4341_v45 = vld [vmem:[#allocation4 + $0x80] sm:$0xff] }
 0x1bd   :  { %v1997_v55 = vsub.f32 %v4957_v51, %v4961_v23  ;;  %v4346_v51 = vld [vmem:[#allocation4 + $0xa8] sm:$0xff] }
 0x1be   :  { %v1828_v11 = vpop.f32.mrf.mxu2  ;;  %v1802_v26 = vpop.f32.mrf.mxu0  ;;  %v4354_v23 = vld [vmem:[#allocation4 + $0xe8] sm:$0xff] }
 0x1bf   :  { %v1816_v36 = vpop.f32.mrf.mxu1  ;;  %v1829_v47 = vadd.f32 %v1828_v11, %v1815_v15  ;;  %v4978_v15 = vadd.f32 1e-05, %v1997_v55 }
 0x1c0   :  { %v1842_v44 = vpop.f32.mrf.mxu3  ;;  %v1817_v39 = vadd.f32 %v1816_v36, %v1802_v26  ;;  %v4348_v26 = vld [vmem:[#allocation4 + $0xb8] sm:$0xff] }
 0x1c1   :  { %v1843_v50 = vadd.f32 %v1842_v44, %v1829_v47  ;;  %v4356_v36 = vld [vmem:[#allocation4 + $0xf8] sm:$0xff]  ;;  %2501 = vmatpush.bf16.msra.mxu2 %v4348_v26  ;;  %4417 = vrsqrt.f32 %v4978_v15  ;;  %v4361_v26 = vld [vmem:[#allocation4 + $0x120] sm:$0xff]  ;;  %vm2008_vm12 = vweird.f32 %v4978_v15 }
 0x1c2   :  { %2515 = vmatpush.bf16.msrb.mxu3 %v4356_v36  ;;  %v4369_v36 = vld [vmem:[#allocation4 + $0x160] sm:$0xff] }
 0x1c6   :  { %v1830_v13 = vpop.f32.mrf.mxu2 }
 0x1c7   :  { %v1831_v40 = vadd.f32 %v1830_v13, %v1817_v39  ;;  %v4347_v39 = vld [vmem:[#allocation4 + $0xb0] sm:$0xff] }
 0x1c8   :  { %v1844_v49 = vpop.f32.mrf.mxu3  ;;  %2502 = vmatpush.bf16.msra.mxu2 %v4347_v39  ;;  %v1999_v39 = vld [vmem:[%s5171_s5] sm:$0x3] }
 0x1c9   :  { %v1845_v52 = vadd.f32 %v1844_v49, %v1831_v40 }
 0x1cc   :  { %2503 = vmatpush.bf16.msra.mxu2 %v4346_v51 }
 0x1d6   :  { %v1856_v27 = vpop.f32.mrf.mxu0 }
 0x1d7   :  { %v1870_v37 = vpop.f32.mrf.mxu1  ;;  %v1857_v28 = vadd.f32 %v1856_v27, %v1843_v50  ;;  %v4329_v27 = vld [vmem:[#allocation4 + $0x20] sm:$0xff] }
 0x1d8   :  { %2476 = vmatpush.bf16.msra.mxu0 %v4329_v27 }
 0x1d9   :  { %v1871_v54 = vadd.f32 %v1870_v37, %v1857_v28  ;;  %v4337_v37 = vld [vmem:[#allocation4 + $0x60] sm:$0xff]  ;;  %v4336_v28 = vld [vmem:[#allocation4 + $0x58] sm:$0xff] }
 0x1da   :  { %2490 = vmatpush.bf16.msrb.mxu1 %v4337_v37  ;;  %v4360_v37 = vld [vmem:[#allocation4 + $0x118] sm:$0xff] }
 0x1de   :  { %v1884_v38 = vpop.f32.mrf.mxu2  ;;  %v1858_v42 = vpop.f32.mrf.mxu0  ;;  %2491 = vmatpush.bf16.msrb.mxu1 %v4336_v28  ;;  %v4367_v28 = vld [vmem:[#allocation4 + $0x150] sm:$0xff] }
 0x1df   :  { %v1872_v57 = vpop.f32.mrf.mxu1  ;;  %v1859_v53 = vadd.f32 %v1858_v42, %v1845_v52  ;;  %v1885_v25 = vadd.f32 %v1884_v38, %v1871_v54  ;;  %v4328_v42 = vld [vmem:[#allocation4 + $0x18] sm:$0xff] }
 0x1e0   :  { %v1898_v21 = vpop.f32.mrf.mxu3  ;;  %2477 = vmatpush.bf16.msra.mxu0 %v4328_v42  ;;  %v4359_v42 = vld [vmem:[#allocation4 + $0x110] sm:$0xff] }
 0x1e1   :  { %v1873_v33 = vadd.f32 %v1872_v57, %v1859_v53  ;;  %v1899_v5 = vadd.f32 %v1898_v21, %v1885_v25  ;;  %v4355_v21 = vld [vmem:[#allocation4 + $0xf0] sm:$0xff] }
 0x1e2   :  { %2516 = vmatpush.bf16.msrb.mxu3 %v4355_v21  ;;  %v4327_v53 = vld [vmem:[#allocation4 + $0x10] sm:$0xff] }
 0x1e4   :  { %2478 = vmatpush.bf16.msra.mxu0 %v4327_v53 }
 0x1e6   :  { %v1886_v10 = vpop.f32.mrf.mxu2  ;;  %2517 = vmatpush.bf16.msrb.mxu3 %v4354_v23  ;;  %v4366_v23 = vld [vmem:[#allocation4 + $0x148] sm:$0xff] }
 0x1e7   :  { %v1887_v24 = vadd.f32 %v1886_v10, %v1873_v33  ;;  %v4335_v10 = vld [vmem:[#allocation4 + $0x50] sm:$0xff]  ;;  %v4353_v33 = vld [vmem:[#allocation4 + $0xe0] sm:$0xff] }
 0x1e8   :  { %v1900_v31 = vpop.f32.mrf.mxu3  ;;  %2492 = vmatpush.bf16.msrb.mxu1 %v4335_v10 }
 0x1e9   :  { %v1901_v29 = vadd.f32 %v1900_v31, %v1887_v24  ;;  %v4326_v24 = vld [vmem:[#allocation4 + $0x8] sm:$0xff] }
 0x1ea   :  { %2518 = vmatpush.bf16.msrb.mxu3 %v4353_v33  ;;  %2479 = vmatpush.bf16.msra.mxu0 %v4326_v24  ;;  %v4357_v33 = vld [vmem:[#allocation4 + $0x100] sm:$0xff] }
 0x1f6   :  { %v1912_v58 = vpop.f32.mrf.mxu0 }
 0x1f7   :  { %v1926_v32 = vpop.f32.mrf.mxu1  ;;  %v1913_v61 = vadd.f32 %v1912_v58, %v1899_v5  ;;  %v4345_v58 = vld [vmem:[#allocation4 + $0xa0] sm:$0xff] }
 0x1f8   :  { %2504 = vmatpush.bf16.msra.mxu2 %v4345_v58 }
 0x1f9   :  { %v1927_v34 = vadd.f32 %v1926_v32, %v1913_v61  ;;  %v4985_v32 = vpop.eup %4417  ;;  %v4334_v61 = vld [vmem:[#allocation4 + $0x48] sm:$0xff] }
 0x1fa   :  { %2493 = vmatpush.bf16.msrb.mxu1 %v4334_v61  ;;  %vm2009_vm9 = vweird.f32 %v4985_v32 }
 0x1fb   :  { %vm2010_vm13 = vmor %vm2008_vm12, %vm2009_vm9 }
 0x1fe   :  { %v1940_v16 = vpop.f32.mrf.mxu2  ;;  %v1954_v62 = vpop.f32.mrf.mxu3 }
 0x1ff   :  { %v1914_v17 = vpop.f32.mrf.mxu0  ;;  %v1941_v0 = vadd.f32 %v1940_v16, %v1927_v34  ;;  %v1928_v3 = vpop.f32.mrf.mxu1  ;;  %v4325_v34 = vld [vmem:[#allocation4] sm:$0xff] }
 0x200   :  { %v1915_v63 = vadd.f32 %v1914_v17, %v1901_v29  ;;  %v2003_v29 = vmul.f32 %v4985_v32, %v4978_v15  ;;  %v4352_v17 = vld [vmem:[#allocation4 + $0xd8] sm:$0xff]  ;;  %2480 = vmatpush.bf16.msra.mxu0 %v4325_v34  ;;  %v4358_v15 = vld [vmem:[#allocation4 + $0x108] sm:$0xff] }
 0x201   :  { %v4965_v30 = vadd.f32 %v1954_v62, %v1941_v0  ;;  %v4344_v62 = vld [vmem:[#allocation4 + $0x98] sm:$0xff]  ;;  %2519 = vmatpush.bf16.msrb.mxu3 %v4352_v17 }
 0x202   :  { %v1929_v4 = vadd.f32 %v1928_v3, %v1915_v63  ;;  %2505 = vmatpush.bf16.msra.mxu2 %v4344_v62  ;;  %v4333_v63 = vld [vmem:[#allocation4 + $0x40] sm:$0xff]  ;;  %v4364_v0 = vld [vmem:[#allocation4 + $0x138] sm:$0xff] }
 0x203   :  { %v1976_v7 = vmul.f32 %v4965_v30, %v4965_v30  ;;  %v4372_v3 = vld [vmem:[#allocation4 + $0x178] sm:$0xff]  ;;  %2494 = vmatpush.bf16.msrb.mxu1 %v4333_v63 }
 0x204   :  { %2529 = vmatpush.bf16.msrb.mxu0 %v4364_v0 }
 0x205   :  { %2520 = vmatpush.bf16.msrb.mxu3 %v4351_v6 }
 0x206   :  { %v1942_v48 = vpop.f32.mrf.mxu2  ;;  %v1956_v60 = vpop.f32.mrf.mxu3 }
 0x207   :  { %v1943_v9 = vadd.f32 %v1942_v48, %v1929_v4  ;;  %v2004_v4 = vmul.f32 %v4985_v32, %v2003_v29  ;;  %v4343_v48 = vld [vmem:[#allocation4 + $0x90] sm:$0xff]  ;;  %2543 = vmatpush.bf16.msra.mxu1 %v4372_v3 }
 0x208   :  { %2506 = vmatpush.bf16.msra.mxu2 %v4343_v48 }
 0x209   :  { %v4967_v14 = vadd.f32 %v1956_v60, %v1943_v9  ;;  %v4363_v9 = vld [vmem:[#allocation4 + $0x130] sm:$0xff]  ;;  %v2005_v12 = vmul.f32 0.5, %v2004_v4 }
 0x20a   :  { %v4371_v60 = vld [vmem:[#allocation4 + $0x170] sm:$0xff]  ;;  %2530 = vmatpush.bf16.msrb.mxu0 %v4363_v9 }
 0x20b   :  { %v1966_v43 = vadd.f32 %v4967_v14, %v4965_v30  ;;  %v1978_v19 = vmul.f32 %v4967_v14, %v4967_v14  ;;  %2544 = vmatpush.bf16.msra.mxu1 %v4371_v60 }
 0x20c   :  { %2507 = vmatpush.bf16.msra.mxu2 %v4342_v2 }
 0x20d   :  { %v1967_v20 = vrot.slane %v1966_v43, 4  ;;  %v1986_v22 = vadd.f32 %v1978_v19, %v1976_v7  ;;  %v4362_v19 = vld [vmem:[#allocation4 + $0x128] sm:$0xff] }
 0x20e   :  { %2531 = vmatpush.bf16.msrb.mxu0 %v4362_v19 }
 0x20f   :  { %v1968_v11 = vadd.f32 %v1967_v20, %v1966_v43  ;;  %v1987_v44 = vrot.slane %v1986_v22, 4  ;;  %v4350_v43 = vld [vmem:[#allocation4 + $0xc8] sm:$0xff] }
 0x210   :  { %v4370_v20 = vld [vmem:[#allocation4 + $0x168] sm:$0xff]  ;;  %2521 = vmatpush.bf16.msrb.mxu3 %v4350_v43  ;;  %2508 = vmatpush.bf16.msra.mxu2 %v4341_v45 }
 0x211   :  { %v1969_v13 = vrot.slane %v1968_v11, 2  ;;  %v1988_v49 = vadd.f32 %v1987_v44, %v1986_v22  ;;  %2545 = vmatpush.bf16.msra.mxu1 %v4370_v20 }
 0x212   :  { %2532 = vmatpush.bf16.msrb.mxu0 %v4361_v26 }
 0x213   :  { %v1970_v47 = vadd.f32 %v1969_v13, %v1968_v11  ;;  %v1989_v38 = vrot.slane %v1988_v49, 2  ;;  %v2006_v11 = vsub.f32 1.5, %v2005_v12 }
 0x214   :  { %2522 = vmatpush.bf16.msrb.mxu3 %v4349_v59 }
 0x215   :  { %v1971_v50 = vrot.slane %v1970_v47, 1  ;;  %v1990_v40 = vadd.f32 %v1989_v38, %v1988_v49  ;;  %v2007_v49 = vmul.f32 %v4985_v32, %v2006_v11  ;;  %2546 = vmatpush.bf16.msra.mxu1 %v4369_v36 }
 0x216   :  { %2533 = vmatpush.bf16.msrb.mxu0 %v4360_v37 }
 0x217   :  { %v1972_v57 = vadd.f32 %v1971_v50, %v1970_v47  ;;  %v1991_v52 = vrot.slane %v1990_v40, 1  ;;  %v4368_v47 = vld [vmem:[#allocation4 + $0x158] sm:$0xff]  ;;  %v2011_v50 = vsel %vm2010_vm13, %v4985_v32, %v2007_v49  ;;  %v4365_v32 = vld [vmem:[#allocation4 + $0x140] sm:$0xff] }
 0x219   :  { %v4981_v55 = vmul.f32 0.0625, %v1972_v57  ;;  %v1992_v54 = vadd.f32 %v1991_v52, %v1990_v40  ;;  %2547 = vmatpush.bf16.msra.mxu1 %v4368_v47 }
 0x21a   :  { %2534 = vmatpush.bf16.msrb.mxu0 %v4359_v42 }
 0x21b   :  { %v1994_v25 = vmul.f32 0.0625, %v1992_v54  ;;  %v1996_v31 = vmul.f32 %v4981_v55, %v4981_v55 }
 0x21d   :  { %v1998_v5 = vsub.f32 %v1994_v25, %v1996_v31  ;;  %2548 = vmatpush.bf16.msra.mxu1 %v4367_v28  ;;  %v2028_v31 = vld [vmem:[%s5172_s6] sm:$0x3] }
 0x21e   :  { %2535 = vmatpush.bf16.msrb.mxu0 %v4358_v15 }
 0x21f   :  { %v2001_v16 = vadd.f32 1e-05, %v1998_v5 }
 0x221   :  { %4419 = vrsqrt.f32 %v2001_v16  ;;  %vm2018_vm10 = vweird.f32 %v2001_v16  ;;  %2549 = vmatpush.bf16.msra.mxu1 %v4366_v23 }
 0x222   :  { %2536 = vmatpush.bf16.msrb.mxu0 %v4357_v33  ;;  %v4380_v33 = vld [vmem:[%s5176_s10 + $0x38] sm:$0xff] }
 0x223   :  { %2812 = vmatpush.bf16.msrb.mxu2 %v4380_v33 }
 0x225   :  { %2550 = vmatpush.bf16.msra.mxu1 %v4365_v32  ;;  %v4396_v32 = vld [vmem:[%s5176_s10 + $0xb8] sm:$0xff] }
 0x227   :  { %v4420_v8 = vpop.eup %4419 }
 0x228   :  { %v2013_v7 = vmul.f32 %v4420_v8, %v2001_v16  ;;  %vm2019_vm8 = vweird.f32 %v4420_v8 }
 0x229   :  { %vm2020_vm11 = vmor %vm2018_vm10, %vm2019_vm8 }
 0x22a   :  { %v2014_v22 = vmul.f32 %v4420_v8, %v2013_v7 }
 0x22c   :  { %v2015_v44 = vmul.f32 0.5, %v2014_v22 }
 0x22e   :  { %v2016_v13 = vsub.f32 1.5, %v2015_v44 }
 0x230   :  { %v2017_v27 = vmul.f32 %v4420_v8, %v2016_v13 }
 0x232   :  { %v2021_v38 = vsel %vm2020_vm11, %v4420_v8, %v2017_v27 }
 0x233   :  { %v2024_v21 = vrot.slane %v2021_v38, 7 }
 0x235   :  { %v2025_v40 = vsel %vm327_vm14, %v2011_v50, %v2024_v21 }
 0x236   :  { %v2027_v57 = vmul.f32 %v2025_v40, %v1999_v39 }
 0x238   :  { %v2030_v52 = vperm.slane %v2027_v57, 0  ;;  %v2031_v51 = vperm.slane %v2027_v57, 1 }
 0x23a   :  { %v2034_v54 = vmul.f32 %v2030_v52, %v4955_v56  ;;  %v2035_v53 = vmul.f32 %v2031_v51, %v4981_v55  ;;  %v2042_v10 = vmul.f32 %v2030_v52, %v4945_v18  ;;  %v2044_v25 = vmul.f32 %v2030_v52, %v4947_v1 }
 0x23b   :  { %v2043_v56 = vmul.f32 %v2031_v51, %v4965_v30  ;;  %v2045_v55 = vmul.f32 %v2031_v51, %v4967_v14 }
 0x23c   :  { %v2038_v58 = vrot.slane %v2035_v53, 7 }
 0x23e   :  { %v2039_v5 = vsel %vm327_vm14, %v2034_v54, %v2038_v58 }
 0x23f   :  { %v2041_v24 = vsub.f32 %v2028_v31, %v2039_v5 }
 0x241   :  { %v2047_v61 = vperm.slane %v2041_v24, 0  ;;  %v2048_v18 = vperm.slane %v2041_v24, 1 }
 0x243   :  { %v2052_v1 = vadd.f32 %v2048_v18, %v2043_v56  ;;  %v2054_v16 = vadd.f32 %v2048_v18, %v2045_v55  ;;  %v2051_v29 = vadd.f32 %v2047_v61, %v2042_v10  ;;  %v2053_v62 = vadd.f32 %v2047_v61, %v2044_v25  ;;  %v4388_v25 = vld [vmem:[%s5176_s10 + $0x78] sm:$0xff]  ;;  %v4387_v55 = vld [vmem:[%s5176_s10 + $0x70] sm:$0xff] }
 0x244   :  { %2826 = vmatpush.bf16.msra.mxu3 %v4388_v25 }
 0x245   :  { %v2056_v17 = vmax.f32 %v2052_v1, 0.0  ;;  %v2058_v34 = vmax.f32 %v2054_v16, 0.0  ;;  %v2055_v63 = vmax.f32 %v2051_v29, 0.0  ;;  %v2057_v0 = vmax.f32 %v2053_v62, 0.0  ;;  %v4379_v1 = vld [vmem:[%s5176_s10 + $0x30] sm:$0xff] }
 0x246   :  { %v4395_v16 = vld [vmem:[%s5176_s10 + $0xb0] sm:$0xff]  ;;  %2813 = vmatpush.bf16.msrb.mxu2 %v4379_v1 }
 0x247   :  { %v2060_v3 = vrot.slane %v2056_v17, 7  ;;  %v2062_v4 = vrot.slane %v2058_v34, 7  ;;  %v2072_v48 = vrot.slane %v2056_v17, 1  ;;  %v2074_v6 = vrot.slane %v2058_v34, 1 }
 0x248   :  { %v2059_v8 = vrot.slane %v2055_v63, 7  ;;  %v2061_v30 = vrot.slane %v2057_v0, 7  ;;  %v2071_v9 = vrot.slane %v2055_v63, 1  ;;  %v2073_v14 = vrot.slane %v2057_v0, 1  ;;  %2827 = vmatpush.bf16.msra.mxu3 %v4387_v55 }
 0x249   :  { %v2085_v60 = vpack.c.bf16 %v2057_v0, %v2055_v63  ;;  %v2086_v2 = vpack.c.bf16 %v2058_v34, %v2056_v17  ;;  %v2064_v12 = vsel %vm407_vm2, %v2060_v3, %v2062_v4  ;;  %v2066_v7 = vsel %vm407_vm2, %v2062_v4, %v2060_v3  ;;  %v4386_v17 = vld [vmem:[%s5176_s10 + $0x68] sm:$0xff] }
 0x24a   :  { %v2063_v43 = vsel %vm407_vm2, %v2059_v8, %v2061_v30  ;;  %v2065_v19 = vsel %vm407_vm2, %v2061_v30, %v2059_v8  ;;  %v4002_v20 = vpack.c.bf16 %v2064_v12, %v2066_v7  ;;  %v2075_v22 = vsel %vm438_vm5, %v2071_v9, %v2073_v14  ;;  %v4378_v0 = vld [vmem:[%s5176_s10 + $0x28] sm:$0xff]  ;;  %v4384_v12 = vld [vmem:[%s5176_s10 + $0x58] sm:$0xff] }
 0x24b   :  { %2509 = vmatmul.bf16.vlgmr.msra.gmra.mxu2 %v2085_v60  ;;  %2523 = vmatmul.bf16.vlgmr.msrb.gmra.mxu3 %v2086_v2  ;;  %v3999_v45 = vpack.c.bf16 %v2063_v43, %v2065_v19  ;;  %v2077_v59 = vsel %vm438_vm5, %v2073_v14, %v2071_v9  ;;  %v2076_v11 = vsel %vm438_vm5, %v2072_v48, %v2074_v6  ;;  %v4394_v3 = vld [vmem:[%s5176_s10 + $0xa8] sm:$0xff]  ;;  %v4377_v9 = vld [vmem:[%s5176_s10 + $0x20] sm:$0xff]  ;;  %v4376_v19 = vld [vmem:[%s5176_s10 + $0x18] sm:$0xff] }
 0x24c   :  { %4003 = vmatmul.msk.bf16.vlgmr.msrb.gmra.mxu1 %vm4813_vm4, %v4002_v20  ;;  %v4005_v44 = vpack.c.bf16 %v2077_v59, %v2075_v22  ;;  %v2078_v26 = vsel %vm438_vm5, %v2074_v6, %v2072_v48  ;;  %2828 = vmatpush.bf16.msra.mxu3 %v4386_v17  ;;  %v4385_v6 = vld [vmem:[%s5176_s10 + $0x60] sm:$0xff]  ;;  %v4392_v20 = vld [vmem:[%s5176_s10 + $0x98] sm:$0xff]  ;;  %v4383_v59 = vld [vmem:[%s5176_s10 + $0x50] sm:$0xff] }
 0x24d   :  { %4000 = vmatmul.msk.bf16.vlgmr.msra.gmra.mxu0 %vm4813_vm4, %v3999_v45  ;;  %v4008_v36 = vpack.c.bf16 %v2078_v26, %v2076_v11  ;;  %2814 = vmatpush.bf16.msrb.mxu2 %v4378_v0  ;;  %v4393_v14 = vld [vmem:[%s5176_s10 + $0xa0] sm:$0xff]  ;;  %v4391_v26 = vld [vmem:[%s5176_s10 + $0x90] sm:$0xff] }
 0x24e   :  { %2840 = vmatpush.bf16.msra.mxu0 %v4396_v32  ;;  %v4399_v0 = vld [vmem:[%s5179_s13 + $0x10] sm:$0xff] }
 0x250   :  { %2829 = vmatpush.bf16.msra.mxu3 %v4385_v6 }
 0x251   :  { %2815 = vmatpush.bf16.msrb.mxu2 %v4377_v9 }
 0x252   :  { %2841 = vmatpush.bf16.msra.mxu0 %v4395_v16 }
 0x254   :  { %2830 = vmatpush.bf16.msra.mxu3 %v4384_v12 }
 0x255   :  { %2816 = vmatpush.bf16.msrb.mxu2 %v4376_v19 }
 0x256   :  { %2842 = vmatpush.bf16.msra.mxu0 %v4394_v3 }
 0x258   :  { %2831 = vmatpush.bf16.msra.mxu3 %v4383_v59 }
 0x25a   :  { %2843 = vmatpush.bf16.msra.mxu0 %v4393_v14 }
 0x25c   :  { %4009 = vmatmul.msk.bf16.vlgmr.msra.gmra.mxu1 %vm4889_vm7, %v4008_v36 }
 0x25d   :  { %4006 = vmatmul.msk.bf16.vlgmr.msrb.gmra.mxu0 %vm4889_vm7, %v4005_v44  ;;  %v4375_v44 = vld [vmem:[%s5176_s10 + $0x10] sm:$0xff] }
 0x25e   :  { %2844 = vmatpush.bf16.msra.mxu0 %v4392_v20  ;;  %2817 = vmatpush.bf16.msrb.mxu2 %v4375_v44 }
 0x262   :  { %2845 = vmatpush.bf16.msra.mxu0 %v4391_v26 }
 0x2c9   :  { %v2496_v13 = vpop.f32.mrf.mxu1 }
 0x2ca   :  { %v2482_v49 = vpop.f32.mrf.mxu0 }
 0x2cb   :  { %v2497_v38 = vadd.f32 %v2496_v13, %v2482_v49  ;;  %v4382_v13 = vld [vmem:[%s5176_s10 + $0x48] sm:$0xff] }
 0x2cc   :  { %v4374_v49 = vld [vmem:[%s5176_s10 + $0x8] sm:$0xff]  ;;  %2832 = vmatpush.bf16.msra.mxu3 %v4382_v13 }
 0x2cd   :  { %2818 = vmatpush.bf16.msrb.mxu2 %v4374_v49 }
 0x2ce   :  { %v2510_v27 = vpop.f32.mrf.mxu2  ;;  %v2524_v39 = vpop.f32.mrf.mxu3 }
 0x2cf   :  { %v2511_v21 = vadd.f32 %v2510_v27, %v2497_v38  ;;  %v4390_v27 = vld [vmem:[%s5176_s10 + $0x88] sm:$0xff]  ;;  %v4389_v38 = vld [vmem:[%s5176_s10 + $0x80] sm:$0xff] }
 0x2d0   :  { %2846 = vmatpush.bf16.msra.mxu0 %v4390_v27 }
 0x2d1   :  { %v2498_v37 = vpop.f32.mrf.mxu1  ;;  %v2525_v57 = vadd.f32 %v2524_v39, %v2511_v21 }
 0x2d2   :  { %v2484_v47 = vpop.f32.mrf.mxu0 }
 0x2d3   :  { %v2499_v50 = vadd.f32 %v2498_v37, %v2484_v47  ;;  %v4381_v37 = vld [vmem:[%s5176_s10 + $0x40] sm:$0xff] }
 0x2d4   :  { %v4373_v47 = vld [vmem:[%s5176_s10] sm:$0xff]  ;;  %2833 = vmatpush.bf16.msra.mxu3 %v4381_v37  ;;  %2847 = vmatpush.bf16.msra.mxu0 %v4389_v38 }
 0x2d5   :  { %2819 = vmatpush.bf16.msrb.mxu2 %v4373_v47 }
 0x2d6   :  { %v2512_v40 = vpop.f32.mrf.mxu2  ;;  %v2526_v15 = vpop.f32.mrf.mxu3 }
 0x2d7   :  { %v2513_v52 = vadd.f32 %v2512_v40, %v2499_v50 }
 0x2d9   :  { %v2552_v28 = vpop.f32.mrf.mxu1  ;;  %v2527_v23 = vadd.f32 %v2526_v15, %v2513_v52  ;;  %v2590_v15 = vld [vmem:[%s5175_s9] sm:$0x1] }
 0x2da   :  { %v2538_v42 = vpop.f32.mrf.mxu0 }
 0x2db   :  { %v2539_v51 = vadd.f32 %v2538_v42, %v2525_v57 }
 0x2dd   :  { %v5032_v53 = vadd.f32 %v2552_v28, %v2539_v51  ;;  %v2577_v28 = vld [vmem:[%s5174_s8] sm:$0x1] }
 0x2df   :  { %v2565_v5 = vmul.f32 %v5032_v53, %v5032_v53 }
 0x2e1   :  { %v2554_v31 = vpop.f32.mrf.mxu1 }
 0x2e2   :  { %v2540_v54 = vpop.f32.mrf.mxu0 }
 0x2e3   :  { %v2541_v10 = vadd.f32 %v2540_v54, %v2527_v23 }
 0x2e5   :  { %v5037_v58 = vadd.f32 %v2554_v31, %v2541_v10 }
 0x2e7   :  { %v2557_v24 = vadd.f32 %v5037_v58, %v5032_v53  ;;  %v2566_v56 = vmul.f32 %v5037_v58, %v5037_v58 }
 0x2e9   :  { %v2558_v61 = vrot.slane %v2557_v24, 4  ;;  %v2567_v18 = vadd.f32 %v2566_v56, %v2565_v5 }
 0x2eb   :  { %v2559_v29 = vadd.f32 %v2558_v61, %v2557_v24  ;;  %v2568_v62 = vrot.slane %v2567_v18, 4 }
 0x2ed   :  { %v2560_v34 = vrot.slane %v2559_v29, 2  ;;  %v2569_v63 = vadd.f32 %v2568_v62, %v2567_v18 }
 0x2ef   :  { %v2561_v4 = vadd.f32 %v2560_v34, %v2559_v29  ;;  %v2570_v48 = vrot.slane %v2569_v63, 2 }
 0x2f1   :  { %v2562_v8 = vrot.slane %v2561_v4, 1  ;;  %v2571_v30 = vadd.f32 %v2570_v48, %v2569_v63  ;;  %v4400_v63 = vld [vmem:[%s5179_s13 + $0x18] sm:$0xff] }
 0x2f2   :  { %2951 = vmatpush.bf16.msrb.mxu1 %v4400_v63 }
 0x2f3   :  { %v2563_v60 = vadd.f32 %v2562_v8, %v2561_v4  ;;  %v2572_v2 = vrot.slane %v2571_v30, 1 }
 0x2f5   :  { %v2564_v7 = vmul.f32 0.0625, %v2563_v60  ;;  %v2573_v43 = vadd.f32 %v2572_v2, %v2571_v30 }
 0x2f6   :  { %2952 = vmatpush.bf16.msrb.mxu1 %v4399_v0 }
 0x2f7   :  { %v2574_v22 = vmul.f32 0.0625, %v2573_v43  ;;  %v2575_v45 = vmul.f32 %v2564_v7, %v2564_v7 }
 0x2f9   :  { %v2576_v11 = vsub.f32 %v2574_v22, %v2575_v45 }
 0x2fa   :  { %2953 = vmatpush.bf16.msrb.mxu1 %v4398_v46 }
 0x2fb   :  { %v2578_v36 = vadd.f32 1e-05, %v2576_v11 }
 0x2fd   :  { %4421 = vrsqrt.f32 %v2578_v36  ;;  %vm2585_vm15 = vweird.f32 %v2578_v36 }
 0x2fe   :  { %2954 = vmatpush.bf16.msrb.mxu1 %v4397_v41 }
 0x303   :  { %v4422_v39 = vpop.eup %4421 }
 0x304   :  { %v2580_v21 = vmul.f32 %v4422_v39, %v2578_v36  ;;  %vm2586_vm14 = vweird.f32 %v4422_v39 }
 0x305   :  { %vm2587_vm0 = vmor %vm2585_vm15, %vm2586_vm14 }
 0x306   :  { %v2581_v50 = vmul.f32 %v4422_v39, %v2580_v21 }
 0x308   :  { %v2582_v40 = vmul.f32 0.5, %v2581_v50 }
 0x30a   :  { %v2583_v42 = vsub.f32 1.5, %v2582_v40 }
 0x30c   :  { %v2584_v57 = vmul.f32 %v4422_v39, %v2583_v42 }
 0x30e   :  { %v2588_v52 = vsel %vm2587_vm0, %v4422_v39, %v2584_v57 }
 0x30f   :  { %v2589_v51 = vmul.f32 %v2588_v52, %v2577_v28 }
 0x311   :  { %v2591_v23 = vmul.f32 %v2589_v51, %v2564_v7  ;;  %v2594_v54 = vperm.slane %v2589_v51, 0 }
 0x313   :  { %v2592_v10 = vsub.f32 %v2590_v15, %v2591_v23  ;;  %v2596_v25 = vmul.f32 %v2594_v54, %v5032_v53  ;;  %v2597_v31 = vmul.f32 %v2594_v54, %v5037_v58  ;;  %v2879_v54 = vld [vmem:[%s5177_s11] sm:$0x1] }
 0x315   :  { %v2599_v33 = vperm.slane %v2592_v10, 0 }
 0x317   :  { %v2601_v32 = vadd.f32 %v2599_v33, %v2596_v25  ;;  %v2602_v5 = vadd.f32 %v2599_v33, %v2597_v31  ;;  %v2892_v33 = vld [vmem:[%s5178_s12] sm:$0x1] }
 0x319   :  { %v2603_v24 = vmax.f32 %v2601_v32, 0.0  ;;  %v2604_v56 = vmax.f32 %v2602_v5, 0.0 }
 0x31b   :  { %v2605_v55 = vrot.slane %v2603_v24, 7  ;;  %v2606_v61 = vrot.slane %v2604_v56, 7  ;;  %v2611_v18 = vrot.slane %v2603_v24, 1  ;;  %v2612_v1 = vrot.slane %v2604_v56, 1 }
 0x31c   :  { %v2618_v16 = vpack.c.bf16 %v2604_v56, %v2603_v24 }
 0x31d   :  { %v2607_v29 = vsel %vm407_vm2, %v2605_v55, %v2606_v61  ;;  %v2608_v62 = vsel %vm407_vm2, %v2606_v61, %v2605_v55  ;;  %v2613_v53 = vsel %vm438_vm5, %v2611_v18, %v2612_v1  ;;  %v2614_v58 = vsel %vm438_vm5, %v2612_v1, %v2611_v18 }
 0x31e   :  { %2834 = vmatmul.bf16.vlgmr.msra.gmra.mxu3 %v2618_v16  ;;  %v4107_v17 = vpack.c.bf16 %v2607_v29, %v2608_v62  ;;  %v4110_v34 = vpack.c.bf16 %v2614_v58, %v2613_v53  ;;  %v4408_v53 = vld [vmem:[%s5180_s14] ss:$0 sm:$0xff]  ;;  %vm2961_vm5 = vcmask 64512  }
 0x320   :  { %4108 = vmatmul.msk.bf16.vlgmr.msrb.gmra.mxu2 %vm4813_vm4, %v4107_v17  ;;  %4111 = vmatmul.msk.bf16.vlgmr.msra.gmra.mxu0 %vm4889_vm7, %v4110_v34 }
 0x39d   :  { %v2849_v3 = vpop.f32.mrf.mxu0 }
 0x3a1   :  { %v2835_v35 = vpop.f32.mrf.mxu3 }
 0x3a3   :  { %v2821_v4 = vpop.f32.mrf.mxu2 }
 0x3a4   :  { %v2836_v48 = vadd.f32 %v2835_v35, %v2821_v4 }
 0x3a5   :  { %v2851_v14 = vpop.f32.mrf.mxu0 }
 0x3a6   :  { %v2850_v6 = vadd.f32 %v2849_v3, %v2836_v48 }
 0x3a8   :  { %v2865_v60 = vmul.f32 %v2850_v6, %v2850_v6  ;;  %v2855_v7 = vsel %vm2854_vm1, %v2850_v6, 0.0 }
 0x3a9   :  { %v2837_v8 = vpop.f32.mrf.mxu3 }
 0x3aa   :  { %v2867_v20 = vsel %vm2854_vm1, %v2865_v60, 0.0 }
 0x3ab   :  { %v2823_v30 = vpop.f32.mrf.mxu2 }
 0x3ac   :  { %v2838_v9 = vadd.f32 %v2837_v8, %v2823_v30 }
 0x3ae   :  { %v2852_v2 = vadd.f32 %v2851_v14, %v2838_v9 }
 0x3b0   :  { %v2866_v12 = vmul.f32 %v2852_v2, %v2852_v2  ;;  %v2856_v43 = vsel %vm2854_vm1, %v2852_v2, 0.0 }
 0x3b1   :  { %v2857_v19 = vadd.f32 %v2856_v43, %v2855_v7 }
 0x3b2   :  { %v2868_v22 = vsel %vm2854_vm1, %v2866_v12, 0.0 }
 0x3b3   :  { %v2858_v45 = vrot.slane %v2857_v19, 4  ;;  %v2869_v59 = vadd.f32 %v2868_v22, %v2867_v20 }
 0x3b5   :  { %v2859_v11 = vadd.f32 %v2858_v45, %v2857_v19  ;;  %v2870_v44 = vrot.slane %v2869_v59, 4 }
 0x3b7   :  { %v2860_v26 = vrot.slane %v2859_v11, 2  ;;  %v2871_v36 = vadd.f32 %v2870_v44, %v2869_v59 }
 0x3b9   :  { %v2861_v13 = vadd.f32 %v2860_v26, %v2859_v11  ;;  %v2872_v49 = vrot.slane %v2871_v36, 2 }
 0x3bb   :  { %v2862_v27 = vrot.slane %v2861_v13, 1  ;;  %v2873_v37 = vadd.f32 %v2872_v49, %v2871_v36 }
 0x3bd   :  { %v2863_v47 = vadd.f32 %v2862_v27, %v2861_v13  ;;  %v2874_v38 = vrot.slane %v2873_v37, 1 }
 0x3bf   :  { %v2864_v39 = vmul.f32 0.0625, %v2863_v47  ;;  %v2875_v21 = vadd.f32 %v2874_v38, %v2873_v37 }
 0x3c1   :  { %v2876_v50 = vmul.f32 0.0625, %v2875_v21  ;;  %v2877_v40 = vmul.f32 %v2864_v39, %v2864_v39 }
 0x3c3   :  { %v2878_v42 = vsub.f32 %v2876_v50, %v2877_v40 }
 0x3c5   :  { %v2880_v28 = vadd.f32 1e-05, %v2878_v42 }
 0x3c7   :  { %4423 = vrsqrt.f32 %v2880_v28  ;;  %vm2887_vm3 = vweird.f32 %v2880_v28 }
 0x3cd   :  { %v4424_v57 = vpop.eup %4423 }
 0x3ce   :  { %v2882_v52 = vmul.f32 %v4424_v57, %v2880_v28  ;;  %vm2888_vm2 = vweird.f32 %v4424_v57 }
 0x3cf   :  { %vm2889_vm4 = vmor %vm2887_vm3, %vm2888_vm2 }
 0x3d0   :  { %v2883_v51 = vmul.f32 %v4424_v57, %v2882_v52 }
 0x3d2   :  { %v2884_v15 = vmul.f32 0.5, %v2883_v51 }
 0x3d4   :  { %v2885_v23 = vsub.f32 1.5, %v2884_v15 }
 0x3d6   :  { %v2886_v10 = vmul.f32 %v4424_v57, %v2885_v23 }
 0x3d8   :  { %v2890_v25 = vsel %vm2889_vm4, %v4424_v57, %v2886_v10 }
 0x3d9   :  { %v2891_v31 = vmul.f32 %v2890_v25, %v2879_v54 }
 0x3db   :  { %v2893_v32 = vmul.f32 %v2891_v31, %v2864_v39  ;;  %v2896_v5 = vperm.slane %v2891_v31, 0 }
 0x3dd   :  { %v2894_v24 = vsub.f32 %v2892_v33, %v2893_v32  ;;  %v2898_v56 = vmul.f32 %v2896_v5, %v2850_v6  ;;  %v2899_v55 = vmul.f32 %v2896_v5, %v2852_v2 }
 0x3df   :  { %v2901_v61 = vperm.slane %v2894_v24, 0 }
 0x3e1   :  { %v2903_v18 = vadd.f32 %v2901_v61, %v2898_v56  ;;  %v2904_v1 = vadd.f32 %v2901_v61, %v2899_v55 }
 0x3e3   :  { %v2905_v16 = vmax.f32 %v2903_v18, 0.0  ;;  %v2906_v29 = vmax.f32 %v2904_v1, 0.0 }
 0x3e5   :  { %v2907_v62 = vpack.c.bf16 %v2906_v29, %v2905_v16 }
 0x3e7   :  { %4128 = vmatmul.msk.bf16.vlgmr.msrb.gmra.mxu1 %vm2854_vm1, %v2907_v62 }
 0x464   :  { %v2956_v58 = vpop.f32.mrf.mxu1 }
 0x465   :  { %v2957_v17 = vadd.f32 %v4408_v53, %v2956_v58 }
 0x467   :  { %2962 = vst.msk [vmem:[%s5181_s15] sm:$0xff] %vm2961_vm5, %v2957_v17 }
 0x46c   :  { %v2958_v34 = vpop.f32.mrf.mxu1 }
 0x46d   :  { %v2959_v63 = vadd.f32 %v4408_v53, %v2958_v34 }
 0x46f   :  { %2963 = vst.msk [vmem:[%s5181_s15 + $0x8] sm:$0xff] %vm2961_vm5, %v2959_v63 }
 0x470   :  { %2968 = vsyncpa [#allocation3], 1 }
 0x471   :  { %2969 = vsyncpa [#allocation5], 1 }

</bundles_post_ra>
